<compile_context>
chip_gen: v7x
topology: tpu7x:2x2x1
jax: 0.10.0
libtpu: 0.0.40
codegen_flags: <defaults>
</compile_context>

<pallas_src>
import functools

import jax
import jax.numpy as jnp
from jax.experimental import pallas as pl
from jax.experimental.pallas import tpu as pltpu


def _round_up(v, m):
    return (v + m - 1) // m * m


def _gru_kernel(x_ref, wih_ref, whh_ref, bfused_ref, bhn_ref, out_ref,
                h_ref, gi_ref):
    """One (batch block, time block) grid step of the GRU recurrence.

    x_ref     : (TB, BB, Ip)        time-major input block
    wih_ref   : (Ip, 3*Hp)          W_ih^T, per-gate padded, resident (1-buffered)
    whh_ref   : (Hp, 3*Hp)          W_hh^T, per-gate padded, resident (1-buffered)
    bfused_ref: (1, 3*Hp)           b_ih + [b_hr, b_hz, 0]
    bhn_ref   : (1, Hp)             b_hn (cannot be pre-fused; multiplied by r)
    out_ref   : (TB, BB, Hp)        hidden states for this block (time-major)
    h_ref     : (BB, Hp) f32        carried hidden state (scratch)
    gi_ref    : (TB*BB, 3*Hp) f32   per-block input projection (scratch)
    """
    t = pl.program_id(1)

    # New sequence (t == 0 also fires at every new batch block since the time
    # axis is the inner grid axis): h_0 = 0 (PyTorch default).
    @pl.when(t == 0)
    def _():
        h_ref[...] = jnp.zeros_like(h_ref)

    TB, BB, Ip = x_ref.shape
    Hp = h_ref.shape[-1]

    whh = whh_ref[...]                                  # (Hp, 3*Hp) resident

    # Parallel part: block input projection as one big MXU matmul, written to
    # a VMEM scratch that the serial loop reads back with dense tiles.
    x2 = x_ref[...].reshape(TB * BB, Ip).astype(whh.dtype)
    gi_ref[...] = (jnp.dot(x2, wih_ref[...],
                           preferred_element_type=jnp.float32)
                   + bfused_ref[...])

    # Hoisted loop invariant (JAX does not CSE broadcast_in_dim).
    bhn_b = jnp.broadcast_to(bhn_ref[...], (BB, Hp))

    # TODO(synk): optionally hold W_hh^T weight-stationary across the TB steps
    # with pltpu.matmul_push_rhs / matmul_acc_lhs / matmul_pop (per-gate
    # 128/256 staging tiles) to avoid re-streaming the weight each timestep.
    def step(i, h):
        base = pl.multiple_of(i * BB, BB)
        gi_t = gi_ref[pl.ds(base, BB), :]                           # (BB, 3*Hp)
        gh = jnp.dot(h.astype(whh.dtype), whh,
                     preferred_element_type=jnp.float32)            # (BB, 3*Hp)
        r = jax.nn.sigmoid(gi_t[:, 0 * Hp:1 * Hp] + gh[:, 0 * Hp:1 * Hp])
        z = jax.nn.sigmoid(gi_t[:, 1 * Hp:2 * Hp] + gh[:, 1 * Hp:2 * Hp])
        n = jnp.tanh(gi_t[:, 2 * Hp:3 * Hp] + r * (gh[:, 2 * Hp:3 * Hp] + bhn_b))
        h = n + z * (h - n)                      # == (1 - z) * n + z * h
        out_ref[i] = h.astype(out_ref.dtype)     # dense (8,128)-tile store
        return h

    h_ref[...] = jax.lax.fori_loop(0, TB, step, h_ref[...],
                                   unroll=min(8, TB))


def _vmem_block_bytes(TB, BB, Ip, Hp, w_bytes, out_bytes):
    x_blk = TB * BB * Ip * 4            # streamed input block (f32), 2 buffers
    out_blk = TB * BB * Hp * out_bytes  # streamed output block, 2 buffers
    gi_scr = TB * BB * 3 * Hp * 4       # scratch: per-block input projection
    h_scr = BB * Hp * 4                 # scratch: carried hidden state
    wih = Ip * 3 * Hp * w_bytes         # resident, single-buffered
    whh = Hp * 3 * Hp * w_bytes         # resident, single-buffered
    bias = 4 * Hp * 4
    return 2 * x_blk + 2 * out_blk + gi_scr + h_scr + wih + whh + bias


@functools.partial(jax.jit, static_argnames=("time_block", "batch_block",
                                              "param_dtype", "out_dtype"))
def unidirectional_gru(x, w_ih, w_hh, b_ih, b_hh, *, time_block=32,
                       batch_block=None, param_dtype=jnp.bfloat16,
                       out_dtype=None):
    """x: (B, T, I). PyTorch-layout weights: w_ih (3H, I), w_hh (3H, H),
    b_ih / b_hh (3H,), gate order [r, z, n]. Returns (B, T, H)."""
    B, T, I = x.shape
    H = w_hh.shape[1]
    out_dtype = x.dtype if out_dtype is None else out_dtype

    # ---- padded / blocked sizes ------------------------------------------
    Hp = _round_up(H, 128)               # per-gate lane padding
    Ip = _round_up(I, 8)                 # sublane padding of the contraction dim
    Bp = _round_up(B, 8)
    if batch_block is None:
        BB = Bp                          # single batch block (v5e/v6e default);
                                         # on v7x set batch_block ~ ceil(B/2)
    else:
        BB = _round_up(min(int(batch_block), Bp), 8)
    Bp = _round_up(Bp, BB)

    TB = _round_up(min(int(time_block), _round_up(T, 8)), 8)

    w_bytes = jnp.dtype(param_dtype).itemsize
    o_bytes = jnp.dtype(out_dtype).itemsize

    # Generation-aware VMEM budget (conservative fallback == v7x 64 MiB/core).
    try:
        vmem_phys = int(pltpu.get_tpu_info().vmem_capacity_bytes)
    except Exception:
        vmem_phys = 64 * 1024 * 1024
    budget = int(vmem_phys * 0.70)
    while TB > 8 and _vmem_block_bytes(TB, BB, Ip, Hp, w_bytes, o_bytes) > budget:
        TB -= 8
    T_pad = _round_up(T, TB)
    need = _vmem_block_bytes(TB, BB, Ip, Hp, w_bytes, o_bytes)
    vmem_limit = int(min(vmem_phys * 0.9, max(need * 1.4, 32 * 1024 * 1024)))

    # ---- parameter / input prep (cheap parallel XLA, outside the kernel) --
    xf = x.astype(jnp.float32)
    x_tm = jnp.transpose(xf, (1, 0, 2))                              # (T, B, I)
    x_tm = jnp.pad(x_tm, ((0, T_pad - T), (0, Bp - B), (0, Ip - I)))

    wih_t = jnp.transpose(w_ih).astype(jnp.float32).reshape(I, 3, H)
    wih_p = jnp.pad(wih_t, ((0, Ip - I), (0, 0), (0, Hp - H)))
    wih_p = wih_p.reshape(Ip, 3 * Hp).astype(param_dtype)            # (Ip, 3Hp)

    whh_t = jnp.transpose(w_hh).astype(jnp.float32).reshape(H, 3, H)
    whh_p = jnp.pad(whh_t, ((0, Hp - H), (0, 0), (0, Hp - H)))
    whh_p = whh_p.reshape(Hp, 3 * Hp).astype(param_dtype)            # (Hp, 3Hp)

    # b_fused = b_ih + [b_hr, b_hz, 0]; only b_hn must stay inside the gate.
    b_fused = (b_ih.astype(jnp.float32)
               + jnp.concatenate([b_hh[:2 * H],
                                  jnp.zeros((H,), b_hh.dtype)]).astype(jnp.float32))
    b_fused = jnp.pad(b_fused.reshape(3, H), ((0, 0), (0, Hp - H)))
    b_fused = b_fused.reshape(1, 3 * Hp)
    bhn = jnp.pad(b_hh[2 * H:].astype(jnp.float32), (0, Hp - H)).reshape(1, Hp)

    resident = dict(pipeline_mode=pl.Buffered(1))   # constant-index blocks

    out_tm = pl.pallas_call(
        _gru_kernel,
        out_shape=jax.ShapeDtypeStruct((T_pad, Bp, Hp), out_dtype),
        grid_spec=pltpu.PrefetchScalarGridSpec(
            num_scalar_prefetch=0,
            grid=(Bp // BB, T_pad // TB),
            in_specs=[
                pl.BlockSpec((TB, BB, Ip), lambda b, t: (t, b, 0)),   # x block
                pl.BlockSpec((Ip, 3 * Hp), lambda b, t: (0, 0), **resident),
                pl.BlockSpec((Hp, 3 * Hp), lambda b, t: (0, 0), **resident),
                pl.BlockSpec((1, 3 * Hp), lambda b, t: (0, 0), **resident),
                pl.BlockSpec((1, Hp), lambda b, t: (0, 0), **resident),
            ],
            out_specs=pl.BlockSpec((TB, BB, Hp), lambda b, t: (t, b, 0)),
            scratch_shapes=[
                pltpu.VMEM((BB, Hp), jnp.float32),           # carried h_t
                pltpu.VMEM((TB * BB, 3 * Hp), jnp.float32),  # per-block gi
            ],
        ),
        compiler_params=pltpu.CompilerParams(
            # Batch blocks are independent (megacore-shardable on v7x);
            # the time axis is the serial recurrence -> "arbitrary".
            dimension_semantics=("parallel", "arbitrary"),
            vmem_limit_bytes=vmem_limit,
        ),
    )(x_tm, wih_p, whh_p, b_fused, bhn)

    # Strip padding and return batch-first (cheap parallel XLA transpose).
    return jnp.transpose(out_tm[:T, :B, :H], (1, 0, 2))


def _gru_reference(x, w_ih, w_hh, b_ih, b_hh):
    """Pure-JAX reference matching torch.nn.GRU (batch_first) semantics."""
    B, T, _I = x.shape
    H = w_hh.shape[1]

    def step(h, x_t):
        gi = x_t @ w_ih.T + b_ih
        gh = h @ w_hh.T + b_hh
        r = jax.nn.sigmoid(gi[:, :H] + gh[:, :H])
        z = jax.nn.sigmoid(gi[:, H:2 * H] + gh[:, H:2 * H])
        n = jnp.tanh(gi[:, 2 * H:] + r * gh[:, 2 * H:])
        h_new = (1.0 - z) * n + z * h
        return h_new, h_new

    h0 = jnp.zeros((B, H), jnp.float32)
    _, ys = jax.lax.scan(step, h0, jnp.transpose(x, (1, 0, 2)))
    return jnp.transpose(ys, (1, 0, 2))


if __name__ == "__main__":
    # Small shapes consistent with the module's forward: (batch, seq, input).
    B, T, I, H = 2, 8, 16, 32

    key = jax.random.PRNGKey(0)
    kx, k1, k2, k3, k4 = jax.random.split(key, 5)

    # Deterministic init mimicking PyTorch's U(-1/sqrt(H), 1/sqrt(H)).
    bound = 1.0 / jnp.sqrt(jnp.float32(H))
    w_ih = jax.random.uniform(k1, (3 * H, I), jnp.float32, -bound, bound)
    w_hh = jax.random.uniform(k2, (3 * H, H), jnp.float32, -bound, bound)
    b_ih = jax.random.uniform(k3, (3 * H,), jnp.float32, -bound, bound)
    b_hh = jax.random.uniform(k4, (3 * H,), jnp.float32, -bound, bound)

    x = jax.random.normal(kx, (B, T, I), jnp.float32)

    ref = _gru_reference(x, w_ih, w_hh, b_ih, b_hh)

    # Full-precision path: tight check against the pure-JAX reference.
    out_f32 = jax.block_until_ready(
        unidirectional_gru(x, w_ih, w_hh, b_ih, b_hh, param_dtype=jnp.float32))
    assert out_f32.shape == (B, T, H), out_f32.shape
    assert jnp.allclose(out_f32, ref, atol=5e-5, rtol=5e-5), \
        float(jnp.max(jnp.abs(out_f32 - ref)))

    # Default path: bf16 MXU operands, f32 accumulation / gates / carried h.
    out_def = jax.block_until_ready(
        unidirectional_gru(x, w_ih, w_hh, b_ih, b_hh))
    assert out_def.shape == (B, T, H), out_def.shape
    assert jnp.allclose(out_def, ref, atol=3e-2, rtol=3e-2), \
        float(jnp.max(jnp.abs(out_def - ref)))

    print("KERNEL_OK")
</pallas_src>

<mosaic_0001>
module attributes {stable_mosaic.version = 11 : i64} {
  func.func @_gru_kernel(%arg0: i32, %arg1: i32, %arg2: memref<8x8x16xf32, #tpu.memory_space<vmem>>, %arg3: memref<16x384xf32, #tpu.memory_space<vmem>>, %arg4: memref<128x384xf32, #tpu.memory_space<vmem>>, %arg5: memref<1x384xf32, #tpu.memory_space<vmem>>, %arg6: memref<1x128xf32, #tpu.memory_space<vmem>>, %arg7: memref<8x8x128xf32, #tpu.memory_space<vmem>>, %arg8: memref<8x128xf32, #tpu.memory_space<vmem>>, %arg9: memref<64x384xf32, #tpu.memory_space<vmem>>) attributes {dimension_semantics = [#tpu.dimension_semantics<parallel>, #tpu.dimension_semantics<arbitrary>], iteration_bounds = array<i64: 1, 1>, scalar_prefetch = 0 : i64, scratch_operands = 2 : i64, tpu.core_type = #tpu.core_type<tc>, window_params = [{transform_indices = @transform_0, window_bounds = array<i64: 8, 8, 16>}, {pipeline_mode = #tpu.pipeline_mode<synchronous>, transform_indices = @transform_1, window_bounds = array<i64: 16, 384>}, {pipeline_mode = #tpu.pipeline_mode<synchronous>, transform_indices = @transform_2, window_bounds = array<i64: 128, 384>}, {pipeline_mode = #tpu.pipeline_mode<synchronous>, transform_indices = @transform_3, window_bounds = array<i64: 1, 384>}, {pipeline_mode = #tpu.pipeline_mode<synchronous>, transform_indices = @transform_4, window_bounds = array<i64: 1, 128>}, {transform_indices = @transform_5, window_bounds = array<i64: 8, 8, 128>}]} {
    %c0_i32 = arith.constant 0 : i32
    %0 = arith.cmpi eq, %arg1, %c0_i32 : i32
    %1 = arith.extui %0 : i1 to i32
    %c0_i32_0 = arith.constant 0 : i32
    %2 = arith.cmpi ne, %1, %c0_i32_0 : i32
    scf.if %2 {
      %cst_74 = arith.constant 0.000000e+00 : f32
      %289 = vector.broadcast %cst_74 : f32 to vector<8x128xf32>
      %c0_75 = arith.constant 0 : index
      %c0_76 = arith.constant 0 : index
      %290 = vector.load %arg8[%c0_75, %c0_76] : memref<8x128xf32, #tpu.memory_space<vmem>>, vector<8x128xf32>
      tpu.vector_store %arg8[%c0_75, %c0_76], %289 {strides = array<i32>} : memref<8x128xf32, #tpu.memory_space<vmem>>, vector<8x128xf32>,
    } else {
    }
    %c0 = arith.constant 0 : index
    %c0_1 = arith.constant 0 : index
    %3 = vector.load %arg4[%c0, %c0_1] : memref<128x384xf32, #tpu.memory_space<vmem>>, vector<128x384xf32>
    %c0_2 = arith.constant 0 : index
    %c0_3 = arith.constant 0 : index
    %c0_4 = arith.constant 0 : index
    %4 = vector.load %arg2[%c0_2, %c0_3, %c0_4] : memref<8x8x16xf32, #tpu.memory_space<vmem>>, vector<8x8x16xf32>
    %5 = vector.shape_cast %4 : vector<8x8x16xf32> to vector<64x16xf32>
    %c0_5 = arith.constant 0 : index
    %c0_6 = arith.constant 0 : index
    %6 = vector.load %arg3[%c0_5, %c0_6] : memref<16x384xf32, #tpu.memory_space<vmem>>, vector<16x384xf32>
    %cst = arith.constant dense<0.000000e+00> : vector<64x384xf32>
    %7 = tpu.matmul %5, %6, %cst {dimension_numbers = #tpu.dot_dimension_numbers<[1], [0], [0], [1], [0, 0, 1, 1], [], []>} : vector<64x16xf32>, vector<16x384xf32>, vector<64x384xf32> -> vector<64x384xf32>
    %c0_7 = arith.constant 0 : index
    %c0_8 = arith.constant 0 : index
    %8 = vector.load %arg5[%c0_7, %c0_8] : memref<1x384xf32, #tpu.memory_space<vmem>>, vector<1x384xf32>
    %9 = vector.broadcast %8 : vector<1x384xf32> to vector<64x384xf32>
    %10 = arith.addf %7, %9 : vector<64x384xf32>
    %c0_9 = arith.constant 0 : index
    %c0_10 = arith.constant 0 : index
    %11 = vector.load %arg9[%c0_9, %c0_10] : memref<64x384xf32, #tpu.memory_space<vmem>>, vector<64x384xf32>
    tpu.vector_store %arg9[%c0_9, %c0_10], %10 {strides = array<i32>} : memref<64x384xf32, #tpu.memory_space<vmem>>, vector<64x384xf32>,
    %c0_11 = arith.constant 0 : index
    %c0_12 = arith.constant 0 : index
    %12 = vector.load %arg6[%c0_11, %c0_12] : memref<1x128xf32, #tpu.memory_space<vmem>>, vector<1x128xf32>
    %13 = vector.shape_cast %12 : vector<1x128xf32> to vector<1x128xf32>
    %14 = vector.broadcast %13 : vector<1x128xf32> to vector<8x128xf32>
    %c0_13 = arith.constant 0 : index
    %c0_14 = arith.constant 0 : index
    %15 = vector.load %arg8[%c0_13, %c0_14] : memref<8x128xf32, #tpu.memory_space<vmem>>, vector<8x128xf32>
    %c0_i32_15 = arith.constant 0 : i32
    %c8_i32 = arith.constant 8 : i32
    %16 = arith.muli %c0_i32_15, %c8_i32 : i32
    %17 = tpu.assume_multiple %16, 8 : i32
    %18 = arith.index_cast %17 : i32 to index
    %c0_16 = arith.constant 0 : index
    %19 = vector.load %arg9[%18, %c0_16] : memref<64x384xf32, #tpu.memory_space<vmem>>, vector<8x384xf32>
    %cst_17 = arith.constant dense<0.000000e+00> : vector<8x384xf32>
    %20 = tpu.matmul %15, %3, %cst_17 {dimension_numbers = #tpu.dot_dimension_numbers<[1], [0], [0], [1], [0, 0, 1, 1], [], []>} : vector<8x128xf32>, vector<128x384xf32>, vector<8x384xf32> -> vector<8x384xf32>
    %21 = vector.extract_strided_slice %19 {offsets = [0, 0], sizes = [8, 128], strides = [1, 1]} : vector<8x384xf32> to vector<8x128xf32>
    %22 = vector.extract_strided_slice %20 {offsets = [0, 0], sizes = [8, 128], strides = [1, 1]} : vector<8x384xf32> to vector<8x128xf32>
    %23 = arith.addf %21, %22 : vector<8x128xf32>
    %24 = arith.negf %23 : vector<8x128xf32>
    %25 = math.exp %24 : vector<8x128xf32>
    %cst_18 = arith.constant 1.000000e+00 : f32
    %26 = vector.broadcast %cst_18 : f32 to vector<8x128xf32>
    %27 = arith.addf %26, %25 : vector<8x128xf32>
    %28 = arith.divf %26, %27 : vector<8x128xf32>
    %29 = vector.extract_strided_slice %19 {offsets = [0, 128], sizes = [8, 128], strides = [1, 1]} : vector<8x384xf32> to vector<8x128xf32>
    %30 = vector.extract_strided_slice %20 {offsets = [0, 128], sizes = [8, 128], strides = [1, 1]} : vector<8x384xf32> to vector<8x128xf32>
    %31 = arith.addf %29, %30 : vector<8x128xf32>
    %32 = arith.negf %31 : vector<8x128xf32>
    %33 = math.exp %32 : vector<8x128xf32>
    %cst_19 = arith.constant 1.000000e+00 : f32
    %34 = vector.broadcast %cst_19 : f32 to vector<8x128xf32>
    %35 = arith.addf %34, %33 : vector<8x128xf32>
    %36 = arith.divf %34, %35 : vector<8x128xf32>
    %37 = vector.extract_strided_slice %19 {offsets = [0, 256], sizes = [8, 128], strides = [1, 1]} : vector<8x384xf32> to vector<8x128xf32>
    %38 = vector.extract_strided_slice %20 {offsets = [0, 256], sizes = [8, 128], strides = [1, 1]} : vector<8x384xf32> to vector<8x128xf32>
    %39 = arith.addf %38, %14 : vector<8x128xf32>
    %40 = arith.mulf %28, %39 : vector<8x128xf32>
    %41 = arith.addf %37, %40 : vector<8x128xf32>
    %42 = math.tanh %41 : vector<8x128xf32>
    %43 = arith.subf %15, %42 : vector<8x128xf32>
    %44 = arith.mulf %36, %43 : vector<8x128xf32>
    %45 = arith.addf %42, %44 : vector<8x128xf32>
    %46 = arith.index_cast %c0_i32_15 : i32 to index
    %c0_20 = arith.constant 0 : index
    %c0_21 = arith.constant 0 : index
    %47 = vector.load %arg7[%46, %c0_20, %c0_21] : memref<8x8x128xf32, #tpu.memory_space<vmem>>, vector<1x8x128xf32>
    %48 = vector.shape_cast %47 : vector<1x8x128xf32> to vector<8x128xf32>
    %49 = vector.shape_cast %45 : vector<8x128xf32> to vector<1x8x128xf32>
    tpu.vector_store %arg7[%46, %c0_20, %c0_21], %49 {strides = array<i32>} : memref<8x8x128xf32, #tpu.memory_space<vmem>>, vector<1x8x128xf32>,
    %c1_i32 = arith.constant 1 : i32
    %c8_i32_22 = arith.constant 8 : i32
    %50 = arith.muli %c1_i32, %c8_i32_22 : i32
    %51 = tpu.assume_multiple %50, 8 : i32
    %52 = arith.index_cast %51 : i32 to index
    %c0_23 = arith.constant 0 : index
    %53 = vector.load %arg9[%52, %c0_23] : memref<64x384xf32, #tpu.memory_space<vmem>>, vector<8x384xf32>
    %cst_24 = arith.constant dense<0.000000e+00> : vector<8x384xf32>
    %54 = tpu.matmul %45, %3, %cst_24 {dimension_numbers = #tpu.dot_dimension_numbers<[1], [0], [0], [1], [0, 0, 1, 1], [], []>} : vector<8x128xf32>, vector<128x384xf32>, vector<8x384xf32> -> vector<8x384xf32>
    %55 = vector.extract_strided_slice %53 {offsets = [0, 0], sizes = [8, 128], strides = [1, 1]} : vector<8x384xf32> to vector<8x128xf32>
    %56 = vector.extract_strided_slice %54 {offsets = [0, 0], sizes = [8, 128], strides = [1, 1]} : vector<8x384xf32> to vector<8x128xf32>
    %57 = arith.addf %55, %56 : vector<8x128xf32>
    %58 = arith.negf %57 : vector<8x128xf32>
    %59 = math.exp %58 : vector<8x128xf32>
    %cst_25 = arith.constant 1.000000e+00 : f32
    %60 = vector.broadcast %cst_25 : f32 to vector<8x128xf32>
    %61 = arith.addf %60, %59 : vector<8x128xf32>
    %62 = arith.divf %60, %61 : vector<8x128xf32>
    %63 = vector.extract_strided_slice %53 {offsets = [0, 128], sizes = [8, 128], strides = [1, 1]} : vector<8x384xf32> to vector<8x128xf32>
    %64 = vector.extract_strided_slice %54 {offsets = [0, 128], sizes = [8, 128], strides = [1, 1]} : vector<8x384xf32> to vector<8x128xf32>
    %65 = arith.addf %63, %64 : vector<8x128xf32>
    %66 = arith.negf %65 : vector<8x128xf32>
    %67 = math.exp %66 : vector<8x128xf32>
    %cst_26 = arith.constant 1.000000e+00 : f32
    %68 = vector.broadcast %cst_26 : f32 to vector<8x128xf32>
    %69 = arith.addf %68, %67 : vector<8x128xf32>
    %70 = arith.divf %68, %69 : vector<8x128xf32>
    %71 = vector.extract_strided_slice %53 {offsets = [0, 256], sizes = [8, 128], strides = [1, 1]} : vector<8x384xf32> to vector<8x128xf32>
    %72 = vector.extract_strided_slice %54 {offsets = [0, 256], sizes = [8, 128], strides = [1, 1]} : vector<8x384xf32> to vector<8x128xf32>
    %73 = arith.addf %72, %14 : vector<8x128xf32>
    %74 = arith.mulf %62, %73 : vector<8x128xf32>
    %75 = arith.addf %71, %74 : vector<8x128xf32>
    %76 = math.tanh %75 : vector<8x128xf32>
    %77 = arith.subf %45, %76 : vector<8x128xf32>
    %78 = arith.mulf %70, %77 : vector<8x128xf32>
    %79 = arith.addf %76, %78 : vector<8x128xf32>
    %80 = arith.index_cast %c1_i32 : i32 to index
    %c0_27 = arith.constant 0 : index
    %c0_28 = arith.constant 0 : index
    %81 = vector.load %arg7[%80, %c0_27, %c0_28] : memref<8x8x128xf32, #tpu.memory_space<vmem>>, vector<1x8x128xf32>
    %82 = vector.shape_cast %81 : vector<1x8x128xf32> to vector<8x128xf32>
    %83 = vector.shape_cast %79 : vector<8x128xf32> to vector<1x8x128xf32>
    tpu.vector_store %arg7[%80, %c0_27, %c0_28], %83 {strides = array<i32>} : memref<8x8x128xf32, #tpu.memory_space<vmem>>, vector<1x8x128xf32>,
    %c2_i32 = arith.constant 2 : i32
    %c8_i32_29 = arith.constant 8 : i32
    %84 = arith.muli %c2_i32, %c8_i32_29 : i32
    %85 = tpu.assume_multiple %84, 8 : i32
    %86 = arith.index_cast %85 : i32 to index
    %c0_30 = arith.constant 0 : index
    %87 = vector.load %arg9[%86, %c0_30] : memref<64x384xf32, #tpu.memory_space<vmem>>, vector<8x384xf32>
    %cst_31 = arith.constant dense<0.000000e+00> : vector<8x384xf32>
    %88 = tpu.matmul %79, %3, %cst_31 {dimension_numbers = #tpu.dot_dimension_numbers<[1], [0], [0], [1], [0, 0, 1, 1], [], []>} : vector<8x128xf32>, vector<128x384xf32>, vector<8x384xf32> -> vector<8x384xf32>
    %89 = vector.extract_strided_slice %87 {offsets = [0, 0], sizes = [8, 128], strides = [1, 1]} : vector<8x384xf32> to vector<8x128xf32>
    %90 = vector.extract_strided_slice %88 {offsets = [0, 0], sizes = [8, 128], strides = [1, 1]} : vector<8x384xf32> to vector<8x128xf32>
    %91 = arith.addf %89, %90 : vector<8x128xf32>
    %92 = arith.negf %91 : vector<8x128xf32>
    %93 = math.exp %92 : vector<8x128xf32>
    %cst_32 = arith.constant 1.000000e+00 : f32
    %94 = vector.broadcast %cst_32 : f32 to vector<8x128xf32>
    %95 = arith.addf %94, %93 : vector<8x128xf32>
    %96 = arith.divf %94, %95 : vector<8x128xf32>
    %97 = vector.extract_strided_slice %87 {offsets = [0, 128], sizes = [8, 128], strides = [1, 1]} : vector<8x384xf32> to vector<8x128xf32>
    %98 = vector.extract_strided_slice %88 {offsets = [0, 128], sizes = [8, 128], strides = [1, 1]} : vector<8x384xf32> to vector<8x128xf32>
    %99 = arith.addf %97, %98 : vector<8x128xf32>
    %100 = arith.negf %99 : vector<8x128xf32>
    %101 = math.exp %100 : vector<8x128xf32>
    %cst_33 = arith.constant 1.000000e+00 : f32
    %102 = vector.broadcast %cst_33 : f32 to vector<8x128xf32>
    %103 = arith.addf %102, %101 : vector<8x128xf32>
    %104 = arith.divf %102, %103 : vector<8x128xf32>
    %105 = vector.extract_strided_slice %87 {offsets = [0, 256], sizes = [8, 128], strides = [1, 1]} : vector<8x384xf32> to vector<8x128xf32>
    %106 = vector.extract_strided_slice %88 {offsets = [0, 256], sizes = [8, 128], strides = [1, 1]} : vector<8x384xf32> to vector<8x128xf32>
    %107 = arith.addf %106, %14 : vector<8x128xf32>
    %108 = arith.mulf %96, %107 : vector<8x128xf32>
    %109 = arith.addf %105, %108 : vector<8x128xf32>
    %110 = math.tanh %109 : vector<8x128xf32>
    %111 = arith.subf %79, %110 : vector<8x128xf32>
    %112 = arith.mulf %104, %111 : vector<8x128xf32>
    %113 = arith.addf %110, %112 : vector<8x128xf32>
    %114 = arith.index_cast %c2_i32 : i32 to index
    %c0_34 = arith.constant 0 : index
    %c0_35 = arith.constant 0 : index
    %115 = vector.load %arg7[%114, %c0_34, %c0_35] : memref<8x8x128xf32, #tpu.memory_space<vmem>>, vector<1x8x128xf32>
    %116 = vector.shape_cast %115 : vector<1x8x128xf32> to vector<8x128xf32>
    %117 = vector.shape_cast %113 : vector<8x128xf32> to vector<1x8x128xf32>
    tpu.vector_store %arg7[%114, %c0_34, %c0_35], %117 {strides = array<i32>} : memref<8x8x128xf32, #tpu.memory_space<vmem>>, vector<1x8x128xf32>,
    %c3_i32 = arith.constant 3 : i32
    %c8_i32_36 = arith.constant 8 : i32
    %118 = arith.muli %c3_i32, %c8_i32_36 : i32
    %119 = tpu.assume_multiple %118, 8 : i32
    %120 = arith.index_cast %119 : i32 to index
    %c0_37 = arith.constant 0 : index
    %121 = vector.load %arg9[%120, %c0_37] : memref<64x384xf32, #tpu.memory_space<vmem>>, vector<8x384xf32>
    %cst_38 = arith.constant dense<0.000000e+00> : vector<8x384xf32>
    %122 = tpu.matmul %113, %3, %cst_38 {dimension_numbers = #tpu.dot_dimension_numbers<[1], [0], [0], [1], [0, 0, 1, 1], [], []>} : vector<8x128xf32>, vector<128x384xf32>, vector<8x384xf32> -> vector<8x384xf32>
    %123 = vector.extract_strided_slice %121 {offsets = [0, 0], sizes = [8, 128], strides = [1, 1]} : vector<8x384xf32> to vector<8x128xf32>
    %124 = vector.extract_strided_slice %122 {offsets = [0, 0], sizes = [8, 128], strides = [1, 1]} : vector<8x384xf32> to vector<8x128xf32>
    %125 = arith.addf %123, %124 : vector<8x128xf32>
    %126 = arith.negf %125 : vector<8x128xf32>
    %127 = math.exp %126 : vector<8x128xf32>
    %cst_39 = arith.constant 1.000000e+00 : f32
    %128 = vector.broadcast %cst_39 : f32 to vector<8x128xf32>
    %129 = arith.addf %128, %127 : vector<8x128xf32>
    %130 = arith.divf %128, %129 : vector<8x128xf32>
    %131 = vector.extract_strided_slice %121 {offsets = [0, 128], sizes = [8, 128], strides = [1, 1]} : vector<8x384xf32> to vector<8x128xf32>
    %132 = vector.extract_strided_slice %122 {offsets = [0, 128], sizes = [8, 128], strides = [1, 1]} : vector<8x384xf32> to vector<8x128xf32>
    %133 = arith.addf %131, %132 : vector<8x128xf32>
    %134 = arith.negf %133 : vector<8x128xf32>
    %135 = math.exp %134 : vector<8x128xf32>
    %cst_40 = arith.constant 1.000000e+00 : f32
    %136 = vector.broadcast %cst_40 : f32 to vector<8x128xf32>
    %137 = arith.addf %136, %135 : vector<8x128xf32>
    %138 = arith.divf %136, %137 : vector<8x128xf32>
    %139 = vector.extract_strided_slice %121 {offsets = [0, 256], sizes = [8, 128], strides = [1, 1]} : vector<8x384xf32> to vector<8x128xf32>
    %140 = vector.extract_strided_slice %122 {offsets = [0, 256], sizes = [8, 128], strides = [1, 1]} : vector<8x384xf32> to vector<8x128xf32>
    %141 = arith.addf %140, %14 : vector<8x128xf32>
    %142 = arith.mulf %130, %141 : vector<8x128xf32>
    %143 = arith.addf %139, %142 : vector<8x128xf32>
    %144 = math.tanh %143 : vector<8x128xf32>
    %145 = arith.subf %113, %144 : vector<8x128xf32>
    %146 = arith.mulf %138, %145 : vector<8x128xf32>
    %147 = arith.addf %144, %146 : vector<8x128xf32>
    %148 = arith.index_cast %c3_i32 : i32 to index
    %c0_41 = arith.constant 0 : index
    %c0_42 = arith.constant 0 : index
    %149 = vector.load %arg7[%148, %c0_41, %c0_42] : memref<8x8x128xf32, #tpu.memory_space<vmem>>, vector<1x8x128xf32>
    %150 = vector.shape_cast %149 : vector<1x8x128xf32> to vector<8x128xf32>
    %151 = vector.shape_cast %147 : vector<8x128xf32> to vector<1x8x128xf32>
    tpu.vector_store %arg7[%148, %c0_41, %c0_42], %151 {strides = array<i32>} : memref<8x8x128xf32, #tpu.memory_space<vmem>>, vector<1x8x128xf32>,
    %c4_i32 = arith.constant 4 : i32
    %c8_i32_43 = arith.constant 8 : i32
    %152 = arith.muli %c4_i32, %c8_i32_43 : i32
    %153 = tpu.assume_multiple %152, 8 : i32
    %154 = arith.index_cast %153 : i32 to index
    %c0_44 = arith.constant 0 : index
    %155 = vector.load %arg9[%154, %c0_44] : memref<64x384xf32, #tpu.memory_space<vmem>>, vector<8x384xf32>
    %cst_45 = arith.constant dense<0.000000e+00> : vector<8x384xf32>
    %156 = tpu.matmul %147, %3, %cst_45 {dimension_numbers = #tpu.dot_dimension_numbers<[1], [0], [0], [1], [0, 0, 1, 1], [], []>} : vector<8x128xf32>, vector<128x384xf32>, vector<8x384xf32> -> vector<8x384xf32>
    %157 = vector.extract_strided_slice %155 {offsets = [0, 0], sizes = [8, 128], strides = [1, 1]} : vector<8x384xf32> to vector<8x128xf32>
    %158 = vector.extract_strided_slice %156 {offsets = [0, 0], sizes = [8, 128], strides = [1, 1]} : vector<8x384xf32> to vector<8x128xf32>
    %159 = arith.addf %157, %158 : vector<8x128xf32>
    %160 = arith.negf %159 : vector<8x128xf32>
    %161 = math.exp %160 : vector<8x128xf32>
    %cst_46 = arith.constant 1.000000e+00 : f32
    %162 = vector.broadcast %cst_46 : f32 to vector<8x128xf32>
    %163 = arith.addf %162, %161 : vector<8x128xf32>
    %164 = arith.divf %162, %163 : vector<8x128xf32>
    %165 = vector.extract_strided_slice %155 {offsets = [0, 128], sizes = [8, 128], strides = [1, 1]} : vector<8x384xf32> to vector<8x128xf32>
    %166 = vector.extract_strided_slice %156 {offsets = [0, 128], sizes = [8, 128], strides = [1, 1]} : vector<8x384xf32> to vector<8x128xf32>
    %167 = arith.addf %165, %166 : vector<8x128xf32>
    %168 = arith.negf %167 : vector<8x128xf32>
    %169 = math.exp %168 : vector<8x128xf32>
    %cst_47 = arith.constant 1.000000e+00 : f32
    %170 = vector.broadcast %cst_47 : f32 to vector<8x128xf32>
    %171 = arith.addf %170, %169 : vector<8x128xf32>
    %172 = arith.divf %170, %171 : vector<8x128xf32>
    %173 = vector.extract_strided_slice %155 {offsets = [0, 256], sizes = [8, 128], strides = [1, 1]} : vector<8x384xf32> to vector<8x128xf32>
    %174 = vector.extract_strided_slice %156 {offsets = [0, 256], sizes = [8, 128], strides = [1, 1]} : vector<8x384xf32> to vector<8x128xf32>
    %175 = arith.addf %174, %14 : vector<8x128xf32>
    %176 = arith.mulf %164, %175 : vector<8x128xf32>
    %177 = arith.addf %173, %176 : vector<8x128xf32>
    %178 = math.tanh %177 : vector<8x128xf32>
    %179 = arith.subf %147, %178 : vector<8x128xf32>
    %180 = arith.mulf %172, %179 : vector<8x128xf32>
    %181 = arith.addf %178, %180 : vector<8x128xf32>
    %182 = arith.index_cast %c4_i32 : i32 to index
    %c0_48 = arith.constant 0 : index
    %c0_49 = arith.constant 0 : index
    %183 = vector.load %arg7[%182, %c0_48, %c0_49] : memref<8x8x128xf32, #tpu.memory_space<vmem>>, vector<1x8x128xf32>
    %184 = vector.shape_cast %183 : vector<1x8x128xf32> to vector<8x128xf32>
    %185 = vector.shape_cast %181 : vector<8x128xf32> to vector<1x8x128xf32>
    tpu.vector_store %arg7[%182, %c0_48, %c0_49], %185 {strides = array<i32>} : memref<8x8x128xf32, #tpu.memory_space<vmem>>, vector<1x8x128xf32>,
    %c5_i32 = arith.constant 5 : i32
    %c8_i32_50 = arith.constant 8 : i32
    %186 = arith.muli %c5_i32, %c8_i32_50 : i32
    %187 = tpu.assume_multiple %186, 8 : i32
    %188 = arith.index_cast %187 : i32 to index
    %c0_51 = arith.constant 0 : index
    %189 = vector.load %arg9[%188, %c0_51] : memref<64x384xf32, #tpu.memory_space<vmem>>, vector<8x384xf32>
    %cst_52 = arith.constant dense<0.000000e+00> : vector<8x384xf32>
    %190 = tpu.matmul %181, %3, %cst_52 {dimension_numbers = #tpu.dot_dimension_numbers<[1], [0], [0], [1], [0, 0, 1, 1], [], []>} : vector<8x128xf32>, vector<128x384xf32>, vector<8x384xf32> -> vector<8x384xf32>
    %191 = vector.extract_strided_slice %189 {offsets = [0, 0], sizes = [8, 128], strides = [1, 1]} : vector<8x384xf32> to vector<8x128xf32>
    %192 = vector.extract_strided_slice %190 {offsets = [0, 0], sizes = [8, 128], strides = [1, 1]} : vector<8x384xf32> to vector<8x128xf32>
    %193 = arith.addf %191, %192 : vector<8x128xf32>
    %194 = arith.negf %193 : vector<8x128xf32>
    %195 = math.exp %194 : vector<8x128xf32>
    %cst_53 = arith.constant 1.000000e+00 : f32
    %196 = vector.broadcast %cst_53 : f32 to vector<8x128xf32>
    %197 = arith.addf %196, %195 : vector<8x128xf32>
    %198 = arith.divf %196, %197 : vector<8x128xf32>
    %199 = vector.extract_strided_slice %189 {offsets = [0, 128], sizes = [8, 128], strides = [1, 1]} : vector<8x384xf32> to vector<8x128xf32>
    %200 = vector.extract_strided_slice %190 {offsets = [0, 128], sizes = [8, 128], strides = [1, 1]} : vector<8x384xf32> to vector<8x128xf32>
    %201 = arith.addf %199, %200 : vector<8x128xf32>
    %202 = arith.negf %201 : vector<8x128xf32>
    %203 = math.exp %202 : vector<8x128xf32>
    %cst_54 = arith.constant 1.000000e+00 : f32
    %204 = vector.broadcast %cst_54 : f32 to vector<8x128xf32>
    %205 = arith.addf %204, %203 : vector<8x128xf32>
    %206 = arith.divf %204, %205 : vector<8x128xf32>
    %207 = vector.extract_strided_slice %189 {offsets = [0, 256], sizes = [8, 128], strides = [1, 1]} : vector<8x384xf32> to vector<8x128xf32>
    %208 = vector.extract_strided_slice %190 {offsets = [0, 256], sizes = [8, 128], strides = [1, 1]} : vector<8x384xf32> to vector<8x128xf32>
    %209 = arith.addf %208, %14 : vector<8x128xf32>
    %210 = arith.mulf %198, %209 : vector<8x128xf32>
    %211 = arith.addf %207, %210 : vector<8x128xf32>
    %212 = math.tanh %211 : vector<8x128xf32>
    %213 = arith.subf %181, %212 : vector<8x128xf32>
    %214 = arith.mulf %206, %213 : vector<8x128xf32>
    %215 = arith.addf %212, %214 : vector<8x128xf32>
    %216 = arith.index_cast %c5_i32 : i32 to index
    %c0_55 = arith.constant 0 : index
    %c0_56 = arith.constant 0 : index
    %217 = vector.load %arg7[%216, %c0_55, %c0_56] : memref<8x8x128xf32, #tpu.memory_space<vmem>>, vector<1x8x128xf32>
    %218 = vector.shape_cast %217 : vector<1x8x128xf32> to vector<8x128xf32>
    %219 = vector.shape_cast %215 : vector<8x128xf32> to vector<1x8x128xf32>
    tpu.vector_store %arg7[%216, %c0_55, %c0_56], %219 {strides = array<i32>} : memref<8x8x128xf32, #tpu.memory_space<vmem>>, vector<1x8x128xf32>,
    %c6_i32 = arith.constant 6 : i32
    %c8_i32_57 = arith.constant 8 : i32
    %220 = arith.muli %c6_i32, %c8_i32_57 : i32
    %221 = tpu.assume_multiple %220, 8 : i32
    %222 = arith.index_cast %221 : i32 to index
    %c0_58 = arith.constant 0 : index
    %223 = vector.load %arg9[%222, %c0_58] : memref<64x384xf32, #tpu.memory_space<vmem>>, vector<8x384xf32>
    %cst_59 = arith.constant dense<0.000000e+00> : vector<8x384xf32>
    %224 = tpu.matmul %215, %3, %cst_59 {dimension_numbers = #tpu.dot_dimension_numbers<[1], [0], [0], [1], [0, 0, 1, 1], [], []>} : vector<8x128xf32>, vector<128x384xf32>, vector<8x384xf32> -> vector<8x384xf32>
    %225 = vector.extract_strided_slice %223 {offsets = [0, 0], sizes = [8, 128], strides = [1, 1]} : vector<8x384xf32> to vector<8x128xf32>
    %226 = vector.extract_strided_slice %224 {offsets = [0, 0], sizes = [8, 128], strides = [1, 1]} : vector<8x384xf32> to vector<8x128xf32>
    %227 = arith.addf %225, %226 : vector<8x128xf32>
    %228 = arith.negf %227 : vector<8x128xf32>
    %229 = math.exp %228 : vector<8x128xf32>
    %cst_60 = arith.constant 1.000000e+00 : f32
    %230 = vector.broadcast %cst_60 : f32 to vector<8x128xf32>
    %231 = arith.addf %230, %229 : vector<8x128xf32>
    %232 = arith.divf %230, %231 : vector<8x128xf32>
    %233 = vector.extract_strided_slice %223 {offsets = [0, 128], sizes = [8, 128], strides = [1, 1]} : vector<8x384xf32> to vector<8x128xf32>
    %234 = vector.extract_strided_slice %224 {offsets = [0, 128], sizes = [8, 128], strides = [1, 1]} : vector<8x384xf32> to vector<8x128xf32>
    %235 = arith.addf %233, %234 : vector<8x128xf32>
    %236 = arith.negf %235 : vector<8x128xf32>
    %237 = math.exp %236 : vector<8x128xf32>
    %cst_61 = arith.constant 1.000000e+00 : f32
    %238 = vector.broadcast %cst_61 : f32 to vector<8x128xf32>
    %239 = arith.addf %238, %237 : vector<8x128xf32>
    %240 = arith.divf %238, %239 : vector<8x128xf32>
    %241 = vector.extract_strided_slice %223 {offsets = [0, 256], sizes = [8, 128], strides = [1, 1]} : vector<8x384xf32> to vector<8x128xf32>
    %242 = vector.extract_strided_slice %224 {offsets = [0, 256], sizes = [8, 128], strides = [1, 1]} : vector<8x384xf32> to vector<8x128xf32>
    %243 = arith.addf %242, %14 : vector<8x128xf32>
    %244 = arith.mulf %232, %243 : vector<8x128xf32>
    %245 = arith.addf %241, %244 : vector<8x128xf32>
    %246 = math.tanh %245 : vector<8x128xf32>
    %247 = arith.subf %215, %246 : vector<8x128xf32>
    %248 = arith.mulf %240, %247 : vector<8x128xf32>
    %249 = arith.addf %246, %248 : vector<8x128xf32>
    %250 = arith.index_cast %c6_i32 : i32 to index
    %c0_62 = arith.constant 0 : index
    %c0_63 = arith.constant 0 : index
    %251 = vector.load %arg7[%250, %c0_62, %c0_63] : memref<8x8x128xf32, #tpu.memory_space<vmem>>, vector<1x8x128xf32>
    %252 = vector.shape_cast %251 : vector<1x8x128xf32> to vector<8x128xf32>
    %253 = vector.shape_cast %249 : vector<8x128xf32> to vector<1x8x128xf32>
    tpu.vector_store %arg7[%250, %c0_62, %c0_63], %253 {strides = array<i32>} : memref<8x8x128xf32, #tpu.memory_space<vmem>>, vector<1x8x128xf32>,
    %c7_i32 = arith.constant 7 : i32
    %c8_i32_64 = arith.constant 8 : i32
    %254 = arith.muli %c7_i32, %c8_i32_64 : i32
    %255 = tpu.assume_multiple %254, 8 : i32
    %256 = arith.index_cast %255 : i32 to index
    %c0_65 = arith.constant 0 : index
    %257 = vector.load %arg9[%256, %c0_65] : memref<64x384xf32, #tpu.memory_space<vmem>>, vector<8x384xf32>
    %cst_66 = arith.constant dense<0.000000e+00> : vector<8x384xf32>
    %258 = tpu.matmul %249, %3, %cst_66 {dimension_numbers = #tpu.dot_dimension_numbers<[1], [0], [0], [1], [0, 0, 1, 1], [], []>} : vector<8x128xf32>, vector<128x384xf32>, vector<8x384xf32> -> vector<8x384xf32>
    %259 = vector.extract_strided_slice %257 {offsets = [0, 0], sizes = [8, 128], strides = [1, 1]} : vector<8x384xf32> to vector<8x128xf32>
    %260 = vector.extract_strided_slice %258 {offsets = [0, 0], sizes = [8, 128], strides = [1, 1]} : vector<8x384xf32> to vector<8x128xf32>
    %261 = arith.addf %259, %260 : vector<8x128xf32>
    %262 = arith.negf %261 : vector<8x128xf32>
    %263 = math.exp %262 : vector<8x128xf32>
    %cst_67 = arith.constant 1.000000e+00 : f32
    %264 = vector.broadcast %cst_67 : f32 to vector<8x128xf32>
    %265 = arith.addf %264, %263 : vector<8x128xf32>
    %266 = arith.divf %264, %265 : vector<8x128xf32>
    %267 = vector.extract_strided_slice %257 {offsets = [0, 128], sizes = [8, 128], strides = [1, 1]} : vector<8x384xf32> to vector<8x128xf32>
    %268 = vector.extract_strided_slice %258 {offsets = [0, 128], sizes = [8, 128], strides = [1, 1]} : vector<8x384xf32> to vector<8x128xf32>
    %269 = arith.addf %267, %268 : vector<8x128xf32>
    %270 = arith.negf %269 : vector<8x128xf32>
    %271 = math.exp %270 : vector<8x128xf32>
    %cst_68 = arith.constant 1.000000e+00 : f32
    %272 = vector.broadcast %cst_68 : f32 to vector<8x128xf32>
    %273 = arith.addf %272, %271 : vector<8x128xf32>
    %274 = arith.divf %272, %273 : vector<8x128xf32>
    %275 = vector.extract_strided_slice %257 {offsets = [0, 256], sizes = [8, 128], strides = [1, 1]} : vector<8x384xf32> to vector<8x128xf32>
    %276 = vector.extract_strided_slice %258 {offsets = [0, 256], sizes = [8, 128], strides = [1, 1]} : vector<8x384xf32> to vector<8x128xf32>
    %277 = arith.addf %276, %14 : vector<8x128xf32>
    %278 = arith.mulf %266, %277 : vector<8x128xf32>
    %279 = arith.addf %275, %278 : vector<8x128xf32>
    %280 = math.tanh %279 : vector<8x128xf32>
    %281 = arith.subf %249, %280 : vector<8x128xf32>
    %282 = arith.mulf %274, %281 : vector<8x128xf32>
    %283 = arith.addf %280, %282 : vector<8x128xf32>
    %284 = arith.index_cast %c7_i32 : i32 to index
    %c0_69 = arith.constant 0 : index
    %c0_70 = arith.constant 0 : index
    %285 = vector.load %arg7[%284, %c0_69, %c0_70] : memref<8x8x128xf32, #tpu.memory_space<vmem>>, vector<1x8x128xf32>
    %286 = vector.shape_cast %285 : vector<1x8x128xf32> to vector<8x128xf32>
    %287 = vector.shape_cast %283 : vector<8x128xf32> to vector<1x8x128xf32>
    tpu.vector_store %arg7[%284, %c0_69, %c0_70], %287 {strides = array<i32>} : memref<8x8x128xf32, #tpu.memory_space<vmem>>, vector<1x8x128xf32>,
    %c8_i32_71 = arith.constant 8 : i32
    %c0_72 = arith.constant 0 : index
    %c0_73 = arith.constant 0 : index
    %288 = vector.load %arg8[%c0_72, %c0_73] : memref<8x128xf32, #tpu.memory_space<vmem>>, vector<8x128xf32>
    tpu.vector_store %arg8[%c0_72, %c0_73], %283 {strides = array<i32>} : memref<8x128xf32, #tpu.memory_space<vmem>>, vector<8x128xf32>,
    return
  }
  func.func @transform_0(%arg0: i32, %arg1: i32) -> (i32, i32, i32) {
    %c0_i32 = arith.constant 0 : i32
    %c0_i32_0 = arith.constant 0 : i32
    return %arg1, %arg0, %c0_i32 : i32, i32, i32
  }
  func.func @transform_1(%arg0: i32, %arg1: i32) -> (i32, i32) {
    %c0_i32 = arith.constant 0 : i32
    %c0_i32_0 = arith.constant 0 : i32
    %c0_i32_1 = arith.constant 0 : i32
    return %c0_i32, %c0_i32_0 : i32, i32
  }
  func.func @transform_2(%arg0: i32, %arg1: i32) -> (i32, i32) {
    %c0_i32 = arith.constant 0 : i32
    %c0_i32_0 = arith.constant 0 : i32
    %c0_i32_1 = arith.constant 0 : i32
    return %c0_i32, %c0_i32_0 : i32, i32
  }
  func.func @transform_3(%arg0: i32, %arg1: i32) -> (i32, i32) {
    %c0_i32 = arith.constant 0 : i32
    %c0_i32_0 = arith.constant 0 : i32
    %c0_i32_1 = arith.constant 0 : i32
    return %c0_i32, %c0_i32_0 : i32, i32
  }
  func.func @transform_4(%arg0: i32, %arg1: i32) -> (i32, i32) {
    %c0_i32 = arith.constant 0 : i32
    %c0_i32_0 = arith.constant 0 : i32
    %c0_i32_1 = arith.constant 0 : i32
    return %c0_i32, %c0_i32_0 : i32, i32
  }
  func.func @transform_5(%arg0: i32, %arg1: i32) -> (i32, i32, i32) {
    %c0_i32 = arith.constant 0 : i32
    %c0_i32_0 = arith.constant 0 : i32
    return %arg1, %arg0, %c0_i32 : i32, i32, i32
  }
}

</mosaic_0001>

<bundles_post_ra>
// kernel: unidirectional_gru.1
= control target key start
LH: loop header
LB: loop body
LE: loop exit
PB: predicated region body
PF: predicated region fallthrough
CT: control target
= control target key end

     0   :  { %v2803_v3 = vmov 0.0   ;;  %vm104_vm0 = vcmask 130048   ;;  %v2804_v48 = vmov 0.0|0.0   ;;  %vm2805_vm1 = vmmov 0   ;;  %s3487_s1 = inlined_call_operand.vmem [shape: f32[16,384], index: 1, kind: input, shape index: {}]   ;;  %s3488_s0 = inlined_call_operand.vmem [shape: f32[8,8,16], index: 0, kind: input, shape index: {}]   ;;  %s3489_s2 = inlined_call_operand.vmem [shape: f32[128,384], index: 2, kind: input, shape index: {}]   ;;  %s3490_s3 = inlined_call_operand.vmem [shape: f32[1,384], index: 3, kind: input, shape index: {}]   ;;  %s3491_s4 = inlined_call_operand.vmem [shape: f32[1,128], index: 4, kind: input, shape index: {}]   ;;  %s3492_s5 = inlined_call_operand.vmem [shape: f32[8,8,128], index: 5, kind: output, shape index: {}]  }
   0x1   :  { %v82_v0 = vld [vmem:[%s3487_s1 + $0x8] sm:$0xff]  ;;  %v85_v1 = vld [vmem:[%s3487_s1 + $0x20] sm:$0xff]  ;;  %193 = vmatprep.mubr.f32.mxu0 %v2803_v3  ;;  %v84_v5 = vld [vmem:[%s3487_s1 + $0x18] sm:$0xff] }
   0x2   :  { %v81_v2 = vld [vmem:[%s3487_s1] sm:$0xff]  ;;  %v2232_v4 = vpack.c.bf16 %v85_v1, %v82_v0  ;;  %v26_v7 = vld [vmem:[%s3489_s2 + $0x8] sm:$0xff]  ;;  %v28_v11 = vld [vmem:[%s3489_s2 + $0x18] sm:$0xff] }
   0x3   :  { %v73_v6 = vld [vmem:[%s3488_s0] sm:$0xff]  ;;  %v2234_v8 = vpack.c.bf16 %v84_v5, %v81_v2  ;;  %v32_v13 = vld [vmem:[%s3489_s2 + $0x38] sm:$0xff]  ;;  %v35_v14 = vld [vmem:[%s3489_s2 + $0x50] sm:$0xff] }
   0x4   :  { %v29_v9 = vld [vmem:[%s3489_s2 + $0x20] sm:$0xff]  ;;  %1940 = vmatprep.mubr.msk.f32.mxu1 %vm104_vm0, %v73_v6  ;;  %2233 = vmatprep.subr.bf16.mxu0 %v2232_v4  ;;  %v2876_v16 = vpack.c.bf16 %v35_v14, %v32_v13  ;;  %v31_v17 = vld [vmem:[%s3489_s2 + $0x30] sm:$0xff]  ;;  %v34_v18 = vld [vmem:[%s3489_s2 + $0x48] sm:$0xff] }
   0x5   :  { %v25_v10 = vld [vmem:[%s3489_s2] sm:$0xff]  ;;  %v2865_v12 = vpack.c.bf16 %v29_v9, %v26_v7  ;;  %2235 = vmatpush1.bf16.msra.mxu0 %v2234_v8  ;;  %v38_v19 = vld [vmem:[%s3489_s2 + $0x68] sm:$0xff]  ;;  %v2896_v22 = vpack.c.bf16 %v34_v18, %v31_v17  ;;  %v40_v25 = vld [vmem:[%s3489_s2 + $0x78] sm:$0xff] }
   0x6   :  { %v2873_v15 = vpack.c.bf16 %v28_v11, %v25_v10  ;;  %v41_v20 = vld [vmem:[%s3489_s2 + $0x80] sm:$0xff]  ;;  %v74_v21 = vld [vmem:[%s3488_s0 + $0x8] sm:$0xff]  ;;  %v44_v26 = vld [vmem:[%s3489_s2 + $0x98] sm:$0xff] }
   0x7   :  { %2241 = vmatprep.subr.bf16.mxu0 %v2865_v12  ;;  %v2899_v23 = vpack.c.bf16 %v41_v20, %v38_v19  ;;  %v37_v24 = vld [vmem:[%s3489_s2 + $0x60] sm:$0xff]  ;;  %v47_v27 = vld [vmem:[%s3489_s2 + $0xb0] sm:$0xff]  ;;  %v86_v29 = vld [vmem:[%s3487_s1 + $0x28] sm:$0xff] }
   0x8   :  { %1750 = vmatmul.mubr.msk.f32.vlgmr.msra.gmra.mrb[0].mxu0 %vm104_vm0, %v73_v6  ;;  %v83_v28 = vld [vmem:[%s3487_s1 + $0x10] sm:$0xff]  ;;  %v2925_v31 = vpack.c.bf16 %v40_v25, %v37_v24  ;;  %v2928_v33 = vpack.c.bf16 %v47_v27, %v44_v26  ;;  %v46_v35 = vld [vmem:[%s3489_s2 + $0xa8] sm:$0xff]  ;;  %v53_v38 = vld [vmem:[%s3489_s2 + $0xe0] sm:$0xff] }
   0x9   :  { %2243 = vmatpush1.bf16.msra.mxu0 %v2873_v15  ;;  %199 = vmatprep.mubr.f32.mxu0 %v2803_v3  ;;  %v75_v30 = vld [vmem:[%s3488_s0 + $0x10] sm:$0xff]  ;;  %v2236_v32 = vpack.c.bf16 %v86_v29, %v83_v28  ;;  %v50_v37 = vld [vmem:[%s3489_s2 + $0xc8] sm:$0xff]  ;;  %v76_v41 = vld [vmem:[%s3488_s0 + $0x18] sm:$0xff] }
   0xa   :  { %2245 = vmatprep.subr.bf16.mxu0 %v2876_v16  ;;  %v43_v34 = vld [vmem:[%s3489_s2 + $0x90] sm:$0xff]  ;;  %v30_v39 = vld [vmem:[%s3489_s2 + $0x28] sm:$0xff]  ;;  %v33_v43 = vld [vmem:[%s3489_s2 + $0x40] sm:$0xff]  ;;  %v2965_v45 = vpack.c.bf16 %v53_v38, %v50_v37 }
   0xb   :  { %v27_v36 = vld [vmem:[%s3489_s2 + $0x10] sm:$0xff]  ;;  %2237 = vmatprep.subr.bf16.mxu1 %v2236_v32  ;;  %v2956_v42 = vpack.c.bf16 %v46_v35, %v43_v34  ;;  %v36_v44 = vld [vmem:[%s3489_s2 + $0x58] sm:$0xff]  ;;  %v49_v46 = vld [vmem:[%s3489_s2 + $0xc0] sm:$0xff]  ;;  %v89_v35 = vlaneseq }
   0xc   :  { %1751 = vmatmul.mubr.msk.f32.gmra.mrb[2].mxu0 %vm104_vm0, %v74_v21  ;;  %2239 = vmatpush3.bf16.msra.mxu1 %v2236_v32  ;;  %v2949_v40 = vpack.c.bf16 %v30_v39, %v27_v36  ;;  %v52_v47 = vld [vmem:[%s3489_s2 + $0xd8] sm:$0xff]  ;;  %v59_v50 = vld [vmem:[%s3489_s2 + $0x110] sm:$0xff]  ;;  %v2983_v51 = vpack.c.bf16 %v36_v44, %v33_v43  ;;  %v77_v52 = vld [vmem:[%s3488_s0 + $0x20] sm:$0xff] }
   0xd   :  { %2247 = vmatpush1.bf16.msra.mxu0 %v2896_v22  ;;  %205 = vmatprep.mubr.f32.mxu0 %v2803_v3  ;;  %v56_v49 = vld [vmem:[%s3489_s2 + $0xf8] sm:$0xff]  ;;  %v2990_v53 = vpack.c.bf16 %v52_v47, %v49_v46  ;;  %v39_v54 = vld [vmem:[%s3489_s2 + $0x70] sm:$0xff]  ;;  %v42_v55 = vld [vmem:[%s3489_s2 + $0x88] sm:$0xff]  ;;  %v90_v36 = vshrl.u32 %v89_v35, 7 }
   0xe   :  { %2249 = vmatprep.subr.bf16.mxu0 %v2899_v23  ;;  %2272 = vmatprep.subr.bf16.mxu1 %v2804_v48  ;;  %v2999_v56 = vpack.c.bf16 %v59_v50, %v56_v49  ;;  %v55_v57 = vld [vmem:[%s3489_s2 + $0xf0] sm:$0xff]  ;;  %v58_v58 = vld [vmem:[%s3489_s2 + $0x108] sm:$0xff]  ;;  %v65_v60 = vld [vmem:[%s3489_s2 + $0x140] sm:$0xff]  ;;  %v3017_v61 = vpack.c.bf16 %v42_v55, %v39_v54 }
   0xf   :  { %1941 = vmatmul.mubr.msk.f32.vlgmr.msra.gmra.mrb[0].mxu1 %vm104_vm0, %v74_v21  ;;  %v62_v59 = vld [vmem:[%s3489_s2 + $0x128] sm:$0xff]  ;;  %v3024_v63 = vpack.c.bf16 %v58_v58, %v55_v57  ;;  %v45_v0 = vld [vmem:[%s3489_s2 + $0xa0] sm:$0xff]  ;;  %v48_v1 = vld [vmem:[%s3489_s2 + $0xb8] sm:$0xff]  ;;  %v99_v37 = vsub.s32 2, %v90_v36 }
  0x10   :  { %1752 = vmatmul.mubr.msk.f32.gmra.mrb[4].mxu0 %vm104_vm0, %v75_v30  ;;  %2274 = vmatpush3.bf16.msra.mxu1 %v2949_v40  ;;  %v78_v62 = vld [vmem:[%s3488_s0 + $0x28] sm:$0xff]  ;;  %v3033_v2 = vpack.c.bf16 %v65_v60, %v62_v59  ;;  %v61_v4 = vld [vmem:[%s3489_s2 + $0x120] sm:$0xff]  ;;  %v64_v5 = vld [vmem:[%s3489_s2 + $0x138] sm:$0xff]  ;;  %v3051_v8 = vpack.c.bf16 %v48_v1, %v45_v0 }
  0x11   :  { %2251 = vmatpush1.bf16.msra.mxu0 %v2925_v31  ;;  %211 = vmatprep.mubr.f32.mxu0 %v2803_v3  ;;  %v68_v6 = vld [vmem:[%s3489_s2 + $0x158] sm:$0xff]  ;;  %v71_v7 = vld [vmem:[%s3489_s2 + $0x170] sm:$0xff]  ;;  %v3058_v10 = vpack.c.bf16 %v64_v5, %v61_v4  ;;  %v54_v13 = vld [vmem:[%s3489_s2 + $0xe8] sm:$0xff]  ;;  %v95_v5 = vsub.s32 1, %v90_v36 }
  0x12   :  { %2253 = vmatprep.subr.bf16.mxu0 %v2928_v33  ;;  %2275 = vmatprep.subr.bf16.mxu1 %v2804_v48  ;;  %v79_v9 = vld [vmem:[%s3488_s0 + $0x30] sm:$0xff]  ;;  %v3067_v14 = vpack.c.bf16 %v71_v7, %v68_v6  ;;  %v70_v18 = vld [vmem:[%s3489_s2 + $0x168] sm:$0xff]  ;;  %v80_v20 = vld [vmem:[%s3488_s0 + $0x38] sm:$0xff] }
  0x13   :  { %1943 = vmatprep.mubr.msk.f32.mxu1 %vm104_vm0, %v75_v30  ;;  %v51_v11 = vld [vmem:[%s3489_s2 + $0xd0] sm:$0xff]  ;;  %v57_v24 = vld [vmem:[%s3489_s2 + $0x100] sm:$0xff]  ;;  %v60_v25 = vld [vmem:[%s3489_s2 + $0x118] sm:$0xff] }
  0x14   :  { %1753 = vmatmul.mubr.msk.f32.gmra.mrb[6].mxu0 %vm104_vm0, %v76_v41  ;;  %2277 = vmatpush3.bf16.msra.mxu1 %v2983_v51  ;;  %v67_v17 = vld [vmem:[%s3489_s2 + $0x150] sm:$0xff]  ;;  %v3079_v19 = vpack.c.bf16 %v54_v13, %v51_v11  ;;  %v3099_v26 = vpack.c.bf16 %v60_v25, %v57_v24  ;;  %v66_v28 = vld [vmem:[%s3489_s2 + $0x148] sm:$0xff]  ;;  %v69_v30 = vld [vmem:[%s3489_s2 + $0x160] sm:$0xff] }
  0x15   :  { %2255 = vmatpush1.bf16.msra.mxu0 %v2956_v42  ;;  %217 = vmatprep.mubr.f32.mxu0 %v2803_v3  ;;  %v3086_v21 = vpack.c.bf16 %v70_v18, %v67_v17  ;;  %v63_v27 = vld [vmem:[%s3489_s2 + $0x130] sm:$0xff]  ;;  %v72_v32 = vld [vmem:[%s3489_s2 + $0x178] sm:$0xff]  ;;  %v87_v38 = vld [vmem:[%s3490_s3] sm:$0x7] }
  0x16   :  { %2257 = vmatprep.subr.bf16.mxu0 %v2965_v45  ;;  %2278 = vmatprep.subr.bf16.mxu1 %v2804_v48  ;;  %v3115_v29 = vpack.c.bf16 %v66_v28, %v63_v27  ;;  %v3130_v34 = vpack.c.bf16 %v72_v32, %v69_v30  ;;  %v100_v39 = vrot.slane %v87_v38, %v99_v37  ;;  %v3194_v27 = vld [vmem:[%s3491_s4] ss:$0 sm:$0xff] }
  0x17   :  { %1944 = vmatmul.mubr.msk.f32.gmra.mrb[2].mxu1 %vm104_vm0, %v76_v41  ;;  %v3188_v11 = vrot.slane %v87_v38, %v95_v5 }
  0x18   :  { %1754 = vmatmul.mubr.msk.f32.gmra.mrb[8].mxu0 %vm104_vm0, %v77_v52  ;;  %2280 = vmatpush3.bf16.msra.mxu1 %v3017_v61 }
  0x19   :  { %2259 = vmatpush1.bf16.msra.mxu0 %v2990_v53  ;;  %223 = vmatprep.mubr.f32.mxu0 %v2803_v3 }
  0x1a   :  { %2261 = vmatprep.subr.bf16.mxu0 %v2999_v56  ;;  %2281 = vmatprep.subr.bf16.mxu1 %v2804_v48 }
  0x1b   :  { %1946 = vmatprep.mubr.msk.f32.mxu1 %vm104_vm0, %v77_v52  ;;  %v91_v52 = vsub.s32 0, %v90_v36 }
  0x1c   :  { %1755 = vmatmul.mubr.msk.f32.gmra.mrb[10].mxu0 %vm104_vm0, %v78_v62  ;;  %2283 = vmatpush3.bf16.msra.mxu1 %v3051_v8 }
  0x1d   :  { %2263 = vmatpush1.bf16.msra.mxu0 %v3024_v63  ;;  %229 = vmatprep.mubr.f32.mxu0 %v2803_v3  ;;  %v3179_v58 = vrot.slane %v87_v38, %v91_v52 }
  0x1e   :  { %2265 = vmatprep.subr.bf16.mxu0 %v3033_v2  ;;  %2284 = vmatprep.subr.bf16.mxu1 %v2804_v48 }
  0x1f   :  { %1947 = vmatmul.mubr.msk.f32.gmra.mrb[4].mxu1 %vm104_vm0, %v78_v62 }
  0x20   :  { %1756 = vmatmul.mubr.msk.f32.gmra.mrb[12].mxu0 %vm104_vm0, %v79_v9  ;;  %2286 = vmatpush3.bf16.msra.mxu1 %v3079_v19 }
  0x21   :  { %2267 = vmatpush1.bf16.msra.mxu0 %v3058_v10  ;;  %235 = vmatprep.mubr.f32.mxu0 %v2803_v3 }
  0x22   :  { %2269 = vmatprep.subr.bf16.mxu0 %v3067_v14  ;;  %2287 = vmatprep.subr.bf16.mxu1 %v2804_v48 }
  0x23   :  { %1949 = vmatprep.mubr.msk.f32.mxu1 %vm104_vm0, %v79_v9 }
  0x24   :  { %1757 = vmatmul.mubr.msk.f32.gmra.mrb[14].mxu0 %vm104_vm0, %v80_v20  ;;  %1950 = vmatmul.mubr.msk.f32.gmra.mrb[6].mxu1 %vm104_vm0, %v80_v20 }
  0x25   :  { %2271 = vmatpush1.bf16.msra.mxu0 %v3086_v21  ;;  %449 = vmatprep.mubr.f32.mxu0 %v2803_v3 }
  0x26   :  { %2297 = vmatprep.subr.bf16.mxu0 %v2865_v12  ;;  %2289 = vmatpush3.bf16.msra.mxu1 %v3099_v26 }
  0x27   :  { %2290 = vmatprep.subr.bf16.mxu1 %v2804_v48  ;;  %1984 = vmatprep.mubr.msk.f32.mxu1 %vm2805_vm1, %v2803_v3 }
  0x28   :  { %450 = vmatmul.mubr.f32.vlgmr.msra.gmra.mrb[0].mxu0 %v2803_v3 }
  0x29   :  { %2299 = vmatpush1.bf16.msra.mxu0 %v2873_v15  ;;  %618 = vmatprep.mubr.f32.mxu0 %v2803_v3 }
  0x2a   :  { %2301 = vmatprep.subr.bf16.mxu0 %v2876_v16  ;;  %2292 = vmatpush3.bf16.msra.mxu1 %v3115_v29 }
  0x2b   :  { %2293 = vmatprep.subr.bf16.mxu1 %v2804_v48 }
  0x2d   :  { %2303 = vmatpush1.bf16.msra.mxu0 %v2896_v22 }
  0x2e   :  { %2305 = vmatprep.subr.bf16.mxu0 %v2899_v23  ;;  %2295 = vmatpush3.bf16.msra.mxu1 %v3130_v34 }
  0x2f   :  { %2328 = vmatprep.subr.bf16.mxu1 %v2804_v48 }
  0x31   :  { %2307 = vmatpush1.bf16.msra.mxu0 %v2925_v31  ;;  %1985 = vmatmul.mubr.f32.vlgmr.msra.gmra.mrb[8].mxu1 %v2803_v3 }
  0x32   :  { %2309 = vmatprep.subr.bf16.mxu0 %v2928_v33  ;;  %2330 = vmatpush3.bf16.msra.mxu1 %v2949_v40 }
  0x33   :  { %2019 = vmatprep.mubr.msk.f32.mxu1 %vm2805_vm1, %v2803_v3  ;;  %2331 = vmatprep.subr.bf16.mxu1 %v2804_v48 }
  0x35   :  { %2311 = vmatpush1.bf16.msra.mxu0 %v2956_v42 }
  0x36   :  { %2313 = vmatprep.subr.bf16.mxu0 %v2965_v45  ;;  %2333 = vmatpush3.bf16.msra.mxu1 %v2983_v51 }
  0x37   :  { %2334 = vmatprep.subr.bf16.mxu1 %v2804_v48 }
  0x39   :  { %2315 = vmatpush1.bf16.msra.mxu0 %v2990_v53 }
  0x3a   :  { %2317 = vmatprep.subr.bf16.mxu0 %v2999_v56  ;;  %2336 = vmatpush3.bf16.msra.mxu1 %v3017_v61 }
  0x3b   :  { %2337 = vmatprep.subr.bf16.mxu1 %v2804_v48 }
  0x3d   :  { %2319 = vmatpush1.bf16.msra.mxu0 %v3024_v63 }
  0x3e   :  { %2321 = vmatprep.subr.bf16.mxu0 %v3033_v2  ;;  %2339 = vmatpush3.bf16.msra.mxu1 %v3051_v8 }
  0x3f   :  { %2340 = vmatprep.subr.bf16.mxu1 %v2804_v48 }
  0x41   :  { %2323 = vmatpush1.bf16.msra.mxu0 %v3058_v10 }
  0x42   :  { %2325 = vmatprep.subr.bf16.mxu0 %v3067_v14  ;;  %2342 = vmatpush3.bf16.msra.mxu1 %v3079_v19 }
  0x43   :  { %2343 = vmatprep.subr.bf16.mxu1 %v2804_v48 }
  0x45   :  { %2327 = vmatpush1.bf16.msra.mxu0 %v3086_v21 }
  0x46   :  { %2353 = vmatprep.subr.bf16.mxu0 %v2865_v12  ;;  %2345 = vmatpush3.bf16.msra.mxu1 %v3099_v26 }
  0x47   :  { %2346 = vmatprep.subr.bf16.mxu1 %v2804_v48 }
  0x4a   :  { %2348 = vmatpush3.bf16.msra.mxu1 %v3115_v29 }
  0x4b   :  { %2349 = vmatprep.subr.bf16.mxu1 %v2804_v48 }
  0x4e   :  { %2351 = vmatpush3.bf16.msra.mxu1 %v3130_v34 }
  0x4f   :  { %2384 = vmatprep.subr.bf16.mxu1 %v2804_v48 }
  0xe2   :  { %v1942_v41 = vpop.f32.mrb[0].mxu1 }
  0xe3   :  { %v3171_v43 = vadd.f32 %v1942_v41, %v100_v39  ;;  %v308_v44 = vpop.f32.mrb[1].mxu1 }
  0xe4   :  { %v309_v35 = vadd.f32 %v308_v44, %v100_v39 }
  0xea   :  { %v1945_v46 = vpop.f32.mrb[2].mxu1 }
  0xeb   :  { %v3173_v47 = vadd.f32 %v1945_v46, %v100_v39  ;;  %v318_v49 = vpop.f32.mrb[3].mxu1 }
  0xec   :  { %v3175_v50 = vadd.f32 %v318_v49, %v100_v39 }
  0xf2   :  { %v1948_v54 = vpop.f32.mrb[4].mxu1 }
  0xf3   :  { %v3177_v55 = vadd.f32 %v1948_v54, %v100_v39  ;;  %v328_v57 = vpop.f32.mrb[5].mxu1 }
  0xf4   :  { %v3181_v59 = vadd.f32 %v328_v57, %v100_v39 }
  0xf7   :  { %v1951_v60 = vpop.f32.mrb[6].mxu1 }
  0xf8   :  { %v3183_v0 = vadd.f32 %v1951_v60, %v100_v39  ;;  %v338_v1 = vpop.f32.mrb[7].mxu1 }
  0xf9   :  { %v3186_v7 = vadd.f32 %v338_v1, %v100_v39 }
  0xfb   :  { %v451_v62 = vpop.f32.mrb[0].mxu0 }
  0xfc   :  { %v2688_v4 = vadd.f32 %v451_v62, %v3179_v58  ;;  %v453_v6 = vpop.f32.mrb[1].mxu0 }
  0xfd   :  { %v2689_v13 = vadd.f32 %v453_v6, %v3188_v11 }
  0xfe   :  { %v1767_v9 = vmul.f32 -1.442695, %v2688_v4 }
  0xff   :  { %v1768_v20 = vmul.f32 -1.442695, %v2689_v13 }
 0x100   :  { %2723 = vpow2.f32 %v1767_v9 }
 0x101   :  { %2725 = vpow2.f32 %v1768_v20 }
 0x104   :  { %v522_v17 = vpop.f32.mrb[8].mxu1 }
 0x105   :  { %v1986_v18 = vpop.f32.mrb[9].mxu1  ;;  %v540_v28 = vadd.f32 %v3194_v27, %v522_v17 }
 0x10a   :  { %v2724_v24 = vpop.eup %2723 }
 0x10b   :  { %v530_v25 = vadd.f32 1.0, %v2724_v24  ;;  %v2726_v30 = vpop.eup %2725 }
 0x10c   :  { %v537_v37 = vadd.f32 1.0, %v2726_v30 }
 0x10d   :  { %2727 = vrcp.f32 %v530_v25 }
 0x117   :  { %v2728_v32 = vpop.eup %2727 }
 0x118   :  { %v541_v36 = vmul.f32 %v2728_v32, %v540_v28 }
 0x11a   :  { %v542_v38 = vadd.f32 %v541_v36, %v309_v35 }
 0x11c   :  { %2729 = vtanh.f32 %v542_v38 }
 0x11d   :  { %2731 = vrcp.f32 %v537_v37 }
 0x126   :  { %v2730_v41 = vpop.eup %2729 }
 0x127   :  { %v544_v46 = vsub.f32 0.0, %v2730_v41  ;;  %v2732_v49 = vpop.eup %2731 }
 0x129   :  { %v545_v52 = vmul.f32 %v2732_v49, %v544_v46 }
 0x12b   :  { %v3197_v54 = vadd.f32 %v2730_v41, %v545_v52 }
 0x12d   :  { %547 = vst [vmem:[%s3492_s5] sm:$0xff] %v3197_v54  ;;  %619 = vmatmul.mubr.f32.vlgmr.msra.gmra.mrb[2].mxu0 %v3197_v54  ;;  %2020 = vmatmul.mubr.f32.vlgmr.msra.gmra.mrb[10].mxu1 %v3197_v54 }
 0x12e   :  { %2355 = vmatpush1.bf16.msra.mxu0 %v2873_v15  ;;  %2386 = vmatpush3.bf16.msra.mxu1 %v2949_v40 }
 0x12f   :  { %2357 = vmatprep.subr.bf16.mxu0 %v2876_v16  ;;  %2387 = vmatprep.subr.bf16.mxu1 %v2804_v48 }
 0x130   :  { %788 = vmatprep.mubr.f32.mxu0 %v2803_v3  ;;  %2054 = vmatprep.mubr.msk.f32.mxu1 %vm2805_vm1, %v2803_v3 }
 0x132   :  { %2359 = vmatpush1.bf16.msra.mxu0 %v2896_v22  ;;  %2389 = vmatpush3.bf16.msra.mxu1 %v2983_v51 }
 0x133   :  { %2361 = vmatprep.subr.bf16.mxu0 %v2899_v23  ;;  %2390 = vmatprep.subr.bf16.mxu1 %v2804_v48 }
 0x136   :  { %2363 = vmatpush1.bf16.msra.mxu0 %v2925_v31  ;;  %2392 = vmatpush3.bf16.msra.mxu1 %v3017_v61 }
 0x137   :  { %2365 = vmatprep.subr.bf16.mxu0 %v2928_v33  ;;  %2393 = vmatprep.subr.bf16.mxu1 %v2804_v48 }
 0x13a   :  { %2367 = vmatpush1.bf16.msra.mxu0 %v2956_v42  ;;  %2395 = vmatpush3.bf16.msra.mxu1 %v3051_v8 }
 0x13b   :  { %2369 = vmatprep.subr.bf16.mxu0 %v2965_v45  ;;  %2396 = vmatprep.subr.bf16.mxu1 %v2804_v48 }
 0x13e   :  { %2371 = vmatpush1.bf16.msra.mxu0 %v2990_v53  ;;  %2398 = vmatpush3.bf16.msra.mxu1 %v3079_v19 }
 0x13f   :  { %2373 = vmatprep.subr.bf16.mxu0 %v2999_v56  ;;  %2399 = vmatprep.subr.bf16.mxu1 %v2804_v48 }
 0x142   :  { %2375 = vmatpush1.bf16.msra.mxu0 %v3024_v63  ;;  %2401 = vmatpush3.bf16.msra.mxu1 %v3099_v26 }
 0x143   :  { %2377 = vmatprep.subr.bf16.mxu0 %v3033_v2  ;;  %2402 = vmatprep.subr.bf16.mxu1 %v2804_v48 }
 0x146   :  { %2379 = vmatpush1.bf16.msra.mxu0 %v3058_v10  ;;  %2404 = vmatpush3.bf16.msra.mxu1 %v3115_v29 }
 0x147   :  { %2381 = vmatprep.subr.bf16.mxu0 %v3067_v14  ;;  %2405 = vmatprep.subr.bf16.mxu1 %v2804_v48 }
 0x14a   :  { %2383 = vmatpush1.bf16.msra.mxu0 %v3086_v21  ;;  %2407 = vmatpush3.bf16.msra.mxu1 %v3130_v34 }
 0x14b   :  { %2409 = vmatprep.subr.bf16.mxu0 %v2865_v12  ;;  %2440 = vmatprep.subr.bf16.mxu1 %v2804_v48 }
 0x200   :  { %v620_v39 = vpop.f32.mrb[2].mxu0  ;;  %v691_v44 = vpop.f32.mrb[10].mxu1 }
 0x201   :  { %v2690_v57 = vadd.f32 %v620_v39, %v3179_v58  ;;  %v622_v60 = vpop.f32.mrb[3].mxu0  ;;  %v2021_v62 = vpop.f32.mrb[11].mxu1  ;;  %v709_v17 = vadd.f32 %v3194_v27, %v691_v44 }
 0x202   :  { %v2691_v4 = vadd.f32 %v622_v60, %v3188_v11 }
 0x203   :  { %v1769_v1 = vmul.f32 -1.442695, %v2690_v57 }
 0x204   :  { %v1770_v5 = vmul.f32 -1.442695, %v2691_v4 }
 0x205   :  { %2733 = vpow2.f32 %v1769_v1 }
 0x206   :  { %2735 = vpow2.f32 %v1770_v5 }
 0x20f   :  { %v2734_v6 = vpop.eup %2733 }
 0x210   :  { %v699_v9 = vadd.f32 1.0, %v2734_v6  ;;  %v2736_v13 = vpop.eup %2735 }
 0x211   :  { %v706_v25 = vadd.f32 1.0, %v2736_v13 }
 0x212   :  { %2737 = vrcp.f32 %v699_v9 }
 0x21c   :  { %v2738_v18 = vpop.eup %2737 }
 0x21d   :  { %v710_v20 = vmul.f32 %v2738_v18, %v709_v17 }
 0x21f   :  { %v711_v24 = vadd.f32 %v710_v20, %v3171_v43 }
 0x221   :  { %2739 = vtanh.f32 %v711_v24 }
 0x222   :  { %2741 = vrcp.f32 %v706_v25 }
 0x22b   :  { %v2740_v28 = vpop.eup %2739 }
 0x22c   :  { %v713_v30 = vsub.f32 %v3197_v54, %v2740_v28  ;;  %v2742_v32 = vpop.eup %2741 }
 0x22e   :  { %v714_v35 = vmul.f32 %v2742_v32, %v713_v30 }
 0x230   :  { %v3245_v36 = vadd.f32 %v2740_v28, %v714_v35 }
 0x232   :  { %1771 = vst [vmem:[%s3492_s5 + $0x8] sm:$0xff] %v3245_v36  ;;  %789 = vmatmul.mubr.f32.vlgmr.msra.gmra.mrb[4].mxu0 %v3245_v36  ;;  %2055 = vmatmul.mubr.f32.vlgmr.msra.gmra.mrb[12].mxu1 %v3245_v36 }
 0x233   :  { %2411 = vmatpush1.bf16.msra.mxu0 %v2873_v15  ;;  %2442 = vmatpush3.bf16.msra.mxu1 %v2949_v40 }
 0x234   :  { %2413 = vmatprep.subr.bf16.mxu0 %v2876_v16  ;;  %2443 = vmatprep.subr.bf16.mxu1 %v2804_v48 }
 0x235   :  { %958 = vmatprep.mubr.f32.mxu0 %v2803_v3  ;;  %2089 = vmatprep.mubr.msk.f32.mxu1 %vm2805_vm1, %v2803_v3 }
 0x237   :  { %2415 = vmatpush1.bf16.msra.mxu0 %v2896_v22  ;;  %2445 = vmatpush3.bf16.msra.mxu1 %v2983_v51 }
 0x238   :  { %2417 = vmatprep.subr.bf16.mxu0 %v2899_v23  ;;  %2446 = vmatprep.subr.bf16.mxu1 %v2804_v48 }
 0x23b   :  { %2419 = vmatpush1.bf16.msra.mxu0 %v2925_v31  ;;  %2448 = vmatpush3.bf16.msra.mxu1 %v3017_v61 }
 0x23c   :  { %2421 = vmatprep.subr.bf16.mxu0 %v2928_v33  ;;  %2449 = vmatprep.subr.bf16.mxu1 %v2804_v48 }
 0x23f   :  { %2423 = vmatpush1.bf16.msra.mxu0 %v2956_v42  ;;  %2451 = vmatpush3.bf16.msra.mxu1 %v3051_v8 }
 0x240   :  { %2425 = vmatprep.subr.bf16.mxu0 %v2965_v45  ;;  %2452 = vmatprep.subr.bf16.mxu1 %v2804_v48 }
 0x243   :  { %2427 = vmatpush1.bf16.msra.mxu0 %v2990_v53  ;;  %2454 = vmatpush3.bf16.msra.mxu1 %v3079_v19 }
 0x244   :  { %2429 = vmatprep.subr.bf16.mxu0 %v2999_v56  ;;  %2455 = vmatprep.subr.bf16.mxu1 %v2804_v48 }
 0x247   :  { %2431 = vmatpush1.bf16.msra.mxu0 %v3024_v63  ;;  %2457 = vmatpush3.bf16.msra.mxu1 %v3099_v26 }
 0x248   :  { %2433 = vmatprep.subr.bf16.mxu0 %v3033_v2  ;;  %2458 = vmatprep.subr.bf16.mxu1 %v2804_v48 }
 0x24b   :  { %2435 = vmatpush1.bf16.msra.mxu0 %v3058_v10  ;;  %2460 = vmatpush3.bf16.msra.mxu1 %v3115_v29 }
 0x24c   :  { %2437 = vmatprep.subr.bf16.mxu0 %v3067_v14  ;;  %2461 = vmatprep.subr.bf16.mxu1 %v2804_v48 }
 0x24f   :  { %2439 = vmatpush1.bf16.msra.mxu0 %v3086_v21  ;;  %2463 = vmatpush3.bf16.msra.mxu1 %v3130_v34 }
 0x250   :  { %2465 = vmatprep.subr.bf16.mxu0 %v2865_v12  ;;  %2496 = vmatprep.subr.bf16.mxu1 %v2804_v48 }
 0x305   :  { %v790_v43 = vpop.f32.mrb[4].mxu0  ;;  %v861_v37 = vpop.f32.mrb[12].mxu1 }
 0x306   :  { %v2692_v38 = vadd.f32 %v790_v43, %v3179_v58  ;;  %v792_v41 = vpop.f32.mrb[5].mxu0  ;;  %v2056_v46 = vpop.f32.mrb[13].mxu1  ;;  %v879_v60 = vadd.f32 %v3194_v27, %v861_v37 }
 0x307   :  { %v2693_v52 = vadd.f32 %v792_v41, %v3188_v11 }
 0x308   :  { %v1772_v49 = vmul.f32 -1.442695, %v2692_v38 }
 0x309   :  { %v1773_v54 = vmul.f32 -1.442695, %v2693_v52 }
 0x30a   :  { %2743 = vpow2.f32 %v1772_v49 }
 0x30b   :  { %2745 = vpow2.f32 %v1773_v54 }
 0x314   :  { %v2744_v39 = vpop.eup %2743 }
 0x315   :  { %v869_v44 = vadd.f32 1.0, %v2744_v39  ;;  %v2746_v57 = vpop.eup %2745 }
 0x316   :  { %v876_v5 = vadd.f32 1.0, %v2746_v57 }
 0x317   :  { %2747 = vrcp.f32 %v869_v44 }
 0x321   :  { %v2748_v62 = vpop.eup %2747 }
 0x322   :  { %v880_v1 = vmul.f32 %v2748_v62, %v879_v60 }
 0x324   :  { %v881_v4 = vadd.f32 %v880_v1, %v3175_v50 }
 0x326   :  { %2749 = vtanh.f32 %v881_v4 }
 0x327   :  { %2751 = vrcp.f32 %v876_v5 }
 0x330   :  { %v2750_v6 = vpop.eup %2749 }
 0x331   :  { %v883_v9 = vsub.f32 %v3245_v36, %v2750_v6  ;;  %v2752_v13 = vpop.eup %2751 }
 0x333   :  { %v884_v17 = vmul.f32 %v2752_v13, %v883_v9 }
 0x335   :  { %v3293_v18 = vadd.f32 %v2750_v6, %v884_v17 }
 0x337   :  { %1774 = vst [vmem:[%s3492_s5 + $0x10] sm:$0xff] %v3293_v18  ;;  %959 = vmatmul.mubr.f32.vlgmr.msra.gmra.mrb[6].mxu0 %v3293_v18  ;;  %2090 = vmatmul.mubr.f32.vlgmr.msra.gmra.mrb[14].mxu1 %v3293_v18 }
 0x338   :  { %2467 = vmatpush1.bf16.msra.mxu0 %v2873_v15  ;;  %2498 = vmatpush3.bf16.msra.mxu1 %v2949_v40 }
 0x339   :  { %2469 = vmatprep.subr.bf16.mxu0 %v2876_v16  ;;  %2499 = vmatprep.subr.bf16.mxu1 %v2804_v48 }
 0x33a   :  { %1128 = vmatprep.mubr.f32.mxu0 %v2803_v3  ;;  %2124 = vmatprep.mubr.msk.f32.mxu1 %vm2805_vm1, %v2803_v3 }
 0x33c   :  { %2471 = vmatpush1.bf16.msra.mxu0 %v2896_v22  ;;  %2501 = vmatpush3.bf16.msra.mxu1 %v2983_v51 }
 0x33d   :  { %2473 = vmatprep.subr.bf16.mxu0 %v2899_v23  ;;  %2502 = vmatprep.subr.bf16.mxu1 %v2804_v48 }
 0x340   :  { %2475 = vmatpush1.bf16.msra.mxu0 %v2925_v31  ;;  %2504 = vmatpush3.bf16.msra.mxu1 %v3017_v61 }
 0x341   :  { %2477 = vmatprep.subr.bf16.mxu0 %v2928_v33  ;;  %2505 = vmatprep.subr.bf16.mxu1 %v2804_v48 }
 0x344   :  { %2479 = vmatpush1.bf16.msra.mxu0 %v2956_v42  ;;  %2507 = vmatpush3.bf16.msra.mxu1 %v3051_v8 }
 0x345   :  { %2481 = vmatprep.subr.bf16.mxu0 %v2965_v45  ;;  %2508 = vmatprep.subr.bf16.mxu1 %v2804_v48 }
 0x348   :  { %2483 = vmatpush1.bf16.msra.mxu0 %v2990_v53  ;;  %2510 = vmatpush3.bf16.msra.mxu1 %v3079_v19 }
 0x349   :  { %2485 = vmatprep.subr.bf16.mxu0 %v2999_v56  ;;  %2511 = vmatprep.subr.bf16.mxu1 %v2804_v48 }
 0x34c   :  { %2487 = vmatpush1.bf16.msra.mxu0 %v3024_v63  ;;  %2513 = vmatpush3.bf16.msra.mxu1 %v3099_v26 }
 0x34d   :  { %2489 = vmatprep.subr.bf16.mxu0 %v3033_v2  ;;  %2514 = vmatprep.subr.bf16.mxu1 %v2804_v48 }
 0x350   :  { %2491 = vmatpush1.bf16.msra.mxu0 %v3058_v10  ;;  %2516 = vmatpush3.bf16.msra.mxu1 %v3115_v29 }
 0x351   :  { %2493 = vmatprep.subr.bf16.mxu0 %v3067_v14  ;;  %2517 = vmatprep.subr.bf16.mxu1 %v2804_v48 }
 0x354   :  { %2495 = vmatpush1.bf16.msra.mxu0 %v3086_v21  ;;  %2519 = vmatpush3.bf16.msra.mxu1 %v3130_v34 }
 0x355   :  { %2521 = vmatprep.subr.bf16.mxu0 %v2865_v12  ;;  %2552 = vmatprep.subr.bf16.mxu1 %v2804_v48 }
 0x40a   :  { %v960_v50 = vpop.f32.mrb[6].mxu0  ;;  %v1031_v20 = vpop.f32.mrb[14].mxu1 }
 0x40b   :  { %v2694_v24 = vadd.f32 %v960_v50, %v3179_v58  ;;  %v962_v25 = vpop.f32.mrb[7].mxu0  ;;  %v2091_v28 = vpop.f32.mrb[15].mxu1  ;;  %v1049_v38 = vadd.f32 %v3194_v27, %v1031_v20 }
 0x40c   :  { %v2695_v32 = vadd.f32 %v962_v25, %v3188_v11 }
 0x40d   :  { %v1775_v30 = vmul.f32 -1.442695, %v2694_v24 }
 0x40e   :  { %v1776_v35 = vmul.f32 -1.442695, %v2695_v32 }
 0x40f   :  { %2753 = vpow2.f32 %v1775_v30 }
 0x410   :  { %2755 = vpow2.f32 %v1776_v35 }
 0x419   :  { %v2754_v36 = vpop.eup %2753 }
 0x41a   :  { %v1039_v43 = vadd.f32 1.0, %v2754_v36  ;;  %v2756_v37 = vpop.eup %2755 }
 0x41b   :  { %v1046_v52 = vadd.f32 1.0, %v2756_v37 }
 0x41c   :  { %2757 = vrcp.f32 %v1039_v43 }
 0x426   :  { %v2758_v41 = vpop.eup %2757 }
 0x427   :  { %v1050_v46 = vmul.f32 %v2758_v41, %v1049_v38 }
 0x429   :  { %v1051_v49 = vadd.f32 %v1050_v46, %v3173_v47 }
 0x42b   :  { %2759 = vtanh.f32 %v1051_v49 }
 0x42c   :  { %2761 = vrcp.f32 %v1046_v52 }
 0x435   :  { %v2760_v54 = vpop.eup %2759 }
 0x436   :  { %v1053_v39 = vsub.f32 %v3293_v18, %v2760_v54  ;;  %v2762_v44 = vpop.eup %2761 }
 0x438   :  { %v1054_v57 = vmul.f32 %v2762_v44, %v1053_v39 }
 0x43a   :  { %v3341_v60 = vadd.f32 %v2760_v54, %v1054_v57 }
 0x43c   :  { %1777 = vst [vmem:[%s3492_s5 + $0x18] sm:$0xff] %v3341_v60  ;;  %1129 = vmatmul.mubr.f32.vlgmr.msra.gmra.mrb[8].mxu0 %v3341_v60  ;;  %2125 = vmatmul.mubr.f32.vlgmr.msra.gmra.mrb[16].mxu1 %v3341_v60 }
 0x43d   :  { %2523 = vmatpush1.bf16.msra.mxu0 %v2873_v15  ;;  %2554 = vmatpush3.bf16.msra.mxu1 %v2949_v40 }
 0x43e   :  { %2525 = vmatprep.subr.bf16.mxu0 %v2876_v16  ;;  %2555 = vmatprep.subr.bf16.mxu1 %v2804_v48 }
 0x43f   :  { %1298 = vmatprep.mubr.f32.mxu0 %v2803_v3  ;;  %2159 = vmatprep.mubr.msk.f32.mxu1 %vm2805_vm1, %v2803_v3 }
 0x441   :  { %2527 = vmatpush1.bf16.msra.mxu0 %v2896_v22  ;;  %2557 = vmatpush3.bf16.msra.mxu1 %v2983_v51 }
 0x442   :  { %2529 = vmatprep.subr.bf16.mxu0 %v2899_v23  ;;  %2558 = vmatprep.subr.bf16.mxu1 %v2804_v48 }
 0x445   :  { %2531 = vmatpush1.bf16.msra.mxu0 %v2925_v31  ;;  %2560 = vmatpush3.bf16.msra.mxu1 %v3017_v61 }
 0x446   :  { %2533 = vmatprep.subr.bf16.mxu0 %v2928_v33  ;;  %2561 = vmatprep.subr.bf16.mxu1 %v2804_v48 }
 0x449   :  { %2535 = vmatpush1.bf16.msra.mxu0 %v2956_v42  ;;  %2563 = vmatpush3.bf16.msra.mxu1 %v3051_v8 }
 0x44a   :  { %2537 = vmatprep.subr.bf16.mxu0 %v2965_v45  ;;  %2564 = vmatprep.subr.bf16.mxu1 %v2804_v48 }
 0x44d   :  { %2539 = vmatpush1.bf16.msra.mxu0 %v2990_v53  ;;  %2566 = vmatpush3.bf16.msra.mxu1 %v3079_v19 }
 0x44e   :  { %2541 = vmatprep.subr.bf16.mxu0 %v2999_v56  ;;  %2567 = vmatprep.subr.bf16.mxu1 %v2804_v48 }
 0x451   :  { %2543 = vmatpush1.bf16.msra.mxu0 %v3024_v63  ;;  %2569 = vmatpush3.bf16.msra.mxu1 %v3099_v26 }
 0x452   :  { %2545 = vmatprep.subr.bf16.mxu0 %v3033_v2  ;;  %2570 = vmatprep.subr.bf16.mxu1 %v2804_v48 }
 0x455   :  { %2547 = vmatpush1.bf16.msra.mxu0 %v3058_v10  ;;  %2572 = vmatpush3.bf16.msra.mxu1 %v3115_v29 }
 0x456   :  { %2549 = vmatprep.subr.bf16.mxu0 %v3067_v14  ;;  %2573 = vmatprep.subr.bf16.mxu1 %v2804_v48 }
 0x459   :  { %2551 = vmatpush1.bf16.msra.mxu0 %v3086_v21  ;;  %2575 = vmatpush3.bf16.msra.mxu1 %v3130_v34 }
 0x45a   :  { %2577 = vmatprep.subr.bf16.mxu0 %v2865_v12  ;;  %2608 = vmatprep.subr.bf16.mxu1 %v2804_v48 }
 0x50f   :  { %v1130_v47 = vpop.f32.mrb[8].mxu0  ;;  %v1201_v62 = vpop.f32.mrb[16].mxu1 }
 0x510   :  { %v2696_v1 = vadd.f32 %v1130_v47, %v3179_v58  ;;  %v1132_v4 = vpop.f32.mrb[9].mxu0  ;;  %v2126_v5 = vpop.f32.mrb[17].mxu1  ;;  %v1219_v20 = vadd.f32 %v3194_v27, %v1201_v62 }
 0x511   :  { %v2697_v9 = vadd.f32 %v1132_v4, %v3188_v11 }
 0x512   :  { %v1778_v6 = vmul.f32 -1.442695, %v2696_v1 }
 0x513   :  { %v1779_v13 = vmul.f32 -1.442695, %v2697_v9 }
 0x514   :  { %2763 = vpow2.f32 %v1778_v6 }
 0x515   :  { %2765 = vpow2.f32 %v1779_v13 }
 0x51e   :  { %v2764_v17 = vpop.eup %2763 }
 0x51f   :  { %v1209_v18 = vadd.f32 1.0, %v2764_v17  ;;  %v2766_v50 = vpop.eup %2765 }
 0x520   :  { %v1216_v30 = vadd.f32 1.0, %v2766_v50 }
 0x521   :  { %2767 = vrcp.f32 %v1209_v18 }
 0x52b   :  { %v2768_v24 = vpop.eup %2767 }
 0x52c   :  { %v1220_v25 = vmul.f32 %v2768_v24, %v1219_v20 }
 0x52e   :  { %v1221_v28 = vadd.f32 %v1220_v25, %v3181_v59 }
 0x530   :  { %2769 = vtanh.f32 %v1221_v28 }
 0x531   :  { %2771 = vrcp.f32 %v1216_v30 }
 0x53a   :  { %v2770_v32 = vpop.eup %2769 }
 0x53b   :  { %v1223_v35 = vsub.f32 %v3341_v60, %v2770_v32  ;;  %v2772_v36 = vpop.eup %2771 }
 0x53d   :  { %v1224_v43 = vmul.f32 %v2772_v36, %v1223_v35 }
 0x53f   :  { %v3389_v37 = vadd.f32 %v2770_v32, %v1224_v43 }
 0x541   :  { %1780 = vst [vmem:[%s3492_s5 + $0x20] sm:$0xff] %v3389_v37  ;;  %1299 = vmatmul.mubr.f32.vlgmr.msra.gmra.mrb[10].mxu0 %v3389_v37  ;;  %2160 = vmatmul.mubr.f32.vlgmr.msra.gmra.mrb[18].mxu1 %v3389_v37 }
 0x542   :  { %2579 = vmatpush1.bf16.msra.mxu0 %v2873_v15  ;;  %2610 = vmatpush3.bf16.msra.mxu1 %v2949_v40 }
 0x543   :  { %2581 = vmatprep.subr.bf16.mxu0 %v2876_v16  ;;  %2611 = vmatprep.subr.bf16.mxu1 %v2804_v48 }
 0x544   :  { %1468 = vmatprep.mubr.f32.mxu0 %v2803_v3  ;;  %2194 = vmatprep.mubr.msk.f32.mxu1 %vm2805_vm1, %v2803_v3 }
 0x546   :  { %2583 = vmatpush1.bf16.msra.mxu0 %v2896_v22  ;;  %2613 = vmatpush3.bf16.msra.mxu1 %v2983_v51 }
 0x547   :  { %2585 = vmatprep.subr.bf16.mxu0 %v2899_v23  ;;  %2614 = vmatprep.subr.bf16.mxu1 %v2804_v48 }
 0x54a   :  { %2587 = vmatpush1.bf16.msra.mxu0 %v2925_v31  ;;  %2616 = vmatpush3.bf16.msra.mxu1 %v3017_v61 }
 0x54b   :  { %2589 = vmatprep.subr.bf16.mxu0 %v2928_v33  ;;  %2617 = vmatprep.subr.bf16.mxu1 %v2804_v48 }
 0x54e   :  { %2591 = vmatpush1.bf16.msra.mxu0 %v2956_v42  ;;  %2619 = vmatpush3.bf16.msra.mxu1 %v3051_v8 }
 0x54f   :  { %2593 = vmatprep.subr.bf16.mxu0 %v2965_v45  ;;  %2620 = vmatprep.subr.bf16.mxu1 %v2804_v48 }
 0x552   :  { %2595 = vmatpush1.bf16.msra.mxu0 %v2990_v53  ;;  %2622 = vmatpush3.bf16.msra.mxu1 %v3079_v19 }
 0x553   :  { %2597 = vmatprep.subr.bf16.mxu0 %v2999_v56  ;;  %2623 = vmatprep.subr.bf16.mxu1 %v2804_v48 }
 0x556   :  { %2599 = vmatpush1.bf16.msra.mxu0 %v3024_v63  ;;  %2625 = vmatpush3.bf16.msra.mxu1 %v3099_v26 }
 0x557   :  { %2601 = vmatprep.subr.bf16.mxu0 %v3033_v2  ;;  %2626 = vmatprep.subr.bf16.mxu1 %v2804_v48 }
 0x55a   :  { %2603 = vmatpush1.bf16.msra.mxu0 %v3058_v10  ;;  %2628 = vmatpush3.bf16.msra.mxu1 %v3115_v29 }
 0x55b   :  { %2605 = vmatprep.subr.bf16.mxu0 %v3067_v14  ;;  %2629 = vmatprep.subr.bf16.mxu1 %v2804_v48 }
 0x55e   :  { %2607 = vmatpush1.bf16.msra.mxu0 %v3086_v21  ;;  %2631 = vmatpush3.bf16.msra.mxu1 %v3130_v34 }
 0x55f   :  { %2633 = vmatprep.subr.bf16.mxu0 %v2865_v12  ;;  %2664 = vmatprep.subr.bf16.mxu1 %v2804_v48 }
 0x614   :  { %v1300_v59 = vpop.f32.mrb[10].mxu0  ;;  %v1371_v38 = vpop.f32.mrb[18].mxu1 }
 0x615   :  { %v2698_v41 = vadd.f32 %v1300_v59, %v3179_v58  ;;  %v1302_v46 = vpop.f32.mrb[11].mxu0  ;;  %v2161_v49 = vpop.f32.mrb[19].mxu1  ;;  %v1389_v12 = vadd.f32 %v3194_v27, %v1371_v38 }
 0x616   :  { %v2699_v54 = vadd.f32 %v1302_v46, %v3188_v11 }
 0x617   :  { %v1781_v52 = vmul.f32 -1.442695, %v2698_v41 }
 0x618   :  { %v1782_v39 = vmul.f32 -1.442695, %v2699_v54 }
 0x619   :  { %2773 = vpow2.f32 %v1781_v52 }
 0x61a   :  { %2775 = vpow2.f32 %v1782_v39 }
 0x623   :  { %v2774_v44 = vpop.eup %2773 }
 0x624   :  { %v1379_v57 = vadd.f32 1.0, %v2774_v44  ;;  %v2776_v60 = vpop.eup %2775 }
 0x625   :  { %v1386_v4 = vadd.f32 1.0, %v2776_v60 }
 0x626   :  { %2777 = vrcp.f32 %v1379_v57 }
 0x630   :  { %v2778_v47 = vpop.eup %2777 }
 0x631   :  { %v1390_v62 = vmul.f32 %v2778_v47, %v1389_v12 }
 0x633   :  { %v1391_v1 = vadd.f32 %v1390_v62, %v3177_v55 }
 0x635   :  { %2779 = vtanh.f32 %v1391_v1 }
 0x636   :  { %2781 = vrcp.f32 %v1386_v4 }
 0x63f   :  { %v2780_v5 = vpop.eup %2779 }
 0x640   :  { %v1393_v6 = vsub.f32 %v3389_v37, %v2780_v5  ;;  %v2782_v9 = vpop.eup %2781 }
 0x642   :  { %v1394_v13 = vmul.f32 %v2782_v9, %v1393_v6 }
 0x644   :  { %v1395_v17 = vadd.f32 %v2780_v5, %v1394_v13 }
 0x646   :  { %1783 = vst [vmem:[%s3492_s5 + $0x28] sm:$0xff] %v1395_v17  ;;  %1469 = vmatmul.mubr.f32.vlgmr.msra.gmra.mrb[12].mxu0 %v1395_v17  ;;  %2195 = vmatmul.mubr.f32.vlgmr.msra.gmra.mrb[20].mxu1 %v1395_v17 }
 0x647   :  { %2635 = vmatpush1.bf16.msra.mxu0 %v2873_v15  ;;  %2666 = vmatpush3.bf16.msra.mxu1 %v2949_v40 }
 0x648   :  { %2637 = vmatprep.subr.bf16.mxu0 %v2876_v16  ;;  %2667 = vmatprep.subr.bf16.mxu1 %v2804_v48 }
 0x649   :  { %1638 = vmatprep.mubr.f32.mxu0 %v2803_v3  ;;  %2229 = vmatprep.mubr.msk.f32.mxu1 %vm2805_vm1, %v2803_v3 }
 0x64b   :  { %2639 = vmatpush1.bf16.msra.mxu0 %v2896_v22  ;;  %2669 = vmatpush3.bf16.msra.mxu1 %v2983_v51 }
 0x64c   :  { %2641 = vmatprep.subr.bf16.mxu0 %v2899_v23  ;;  %2670 = vmatprep.subr.bf16.mxu1 %v2804_v48 }
 0x64f   :  { %2643 = vmatpush1.bf16.msra.mxu0 %v2925_v31  ;;  %2672 = vmatpush3.bf16.msra.mxu1 %v3017_v61 }
 0x650   :  { %2645 = vmatprep.subr.bf16.mxu0 %v2928_v33  ;;  %2673 = vmatprep.subr.bf16.mxu1 %v2804_v48 }
 0x653   :  { %2647 = vmatpush1.bf16.msra.mxu0 %v2956_v42  ;;  %2675 = vmatpush3.bf16.msra.mxu1 %v3051_v8 }
 0x654   :  { %2649 = vmatprep.subr.bf16.mxu0 %v2965_v45  ;;  %2676 = vmatprep.subr.bf16.mxu1 %v2804_v48 }
 0x657   :  { %2651 = vmatpush1.bf16.msra.mxu0 %v2990_v53  ;;  %2678 = vmatpush3.bf16.msra.mxu1 %v3079_v19 }
 0x658   :  { %2653 = vmatprep.subr.bf16.mxu0 %v2999_v56  ;;  %2679 = vmatprep.subr.bf16.mxu1 %v2804_v48 }
 0x65b   :  { %2655 = vmatpush1.bf16.msra.mxu0 %v3024_v63  ;;  %2681 = vmatpush3.bf16.msra.mxu1 %v3099_v26 }
 0x65c   :  { %2657 = vmatprep.subr.bf16.mxu0 %v3033_v2  ;;  %2682 = vmatprep.subr.bf16.mxu1 %v2804_v48 }
 0x65f   :  { %2659 = vmatpush1.bf16.msra.mxu0 %v3058_v10  ;;  %2684 = vmatpush3.bf16.msra.mxu1 %v3115_v29 }
 0x660   :  { %2661 = vmatprep.subr.bf16.mxu0 %v3067_v14  ;;  %2685 = vmatprep.subr.bf16.mxu1 %v2804_v48 }
 0x663   :  { %2663 = vmatpush1.bf16.msra.mxu0 %v3086_v21  ;;  %2687 = vmatpush3.bf16.msra.mxu1 %v3130_v34 }
 0x719   :  { %v1470_v3 = vpop.f32.mrb[12].mxu0  ;;  %v1541_v15 = vpop.f32.mrb[20].mxu1 }
 0x71a   :  { %v2700_v16 = vadd.f32 %v1470_v3, %v3179_v58  ;;  %v1472_v22 = vpop.f32.mrb[13].mxu0  ;;  %v2196_v23 = vpop.f32.mrb[21].mxu1  ;;  %v1559_v51 = vadd.f32 %v3194_v27, %v1541_v15 }
 0x71b   :  { %v2701_v33 = vadd.f32 %v1472_v22, %v3188_v11 }
 0x71c   :  { %v1784_v31 = vmul.f32 -1.442695, %v2700_v16 }
 0x71d   :  { %v1785_v40 = vmul.f32 -1.442695, %v2701_v33 }
 0x71e   :  { %2783 = vpow2.f32 %v1784_v31 }
 0x71f   :  { %2785 = vpow2.f32 %v1785_v40 }
 0x728   :  { %v2784_v42 = vpop.eup %2783 }
 0x729   :  { %v1549_v45 = vadd.f32 1.0, %v2784_v42  ;;  %v2786_v48 = vpop.eup %2785 }
 0x72a   :  { %v1556_v63 = vadd.f32 1.0, %v2786_v48 }
 0x72b   :  { %2787 = vrcp.f32 %v1549_v45 }
 0x735   :  { %v2788_v53 = vpop.eup %2787 }
 0x736   :  { %v1560_v56 = vmul.f32 %v2788_v53, %v1559_v51 }
 0x738   :  { %v1561_v61 = vadd.f32 %v1560_v56, %v3186_v7 }
 0x73a   :  { %2789 = vtanh.f32 %v1561_v61 }
 0x73b   :  { %2791 = vrcp.f32 %v1556_v63 }
 0x744   :  { %v2790_v2 = vpop.eup %2789 }
 0x745   :  { %v1563_v8 = vsub.f32 %v1395_v17, %v2790_v2  ;;  %v2792_v10 = vpop.eup %2791 }
 0x747   :  { %v1564_v14 = vmul.f32 %v2792_v10, %v1563_v8 }
 0x749   :  { %v1565_v19 = vadd.f32 %v2790_v2, %v1564_v14 }
 0x74b   :  { %1786 = vst [vmem:[%s3492_s5 + $0x30] sm:$0xff] %v1565_v19  ;;  %1639 = vmatmul.mubr.f32.vlgmr.msra.gmra.mrb[14].mxu0 %v1565_v19  ;;  %2230 = vmatmul.mubr.f32.vlgmr.msra.gmra.mrb[22].mxu1 %v1565_v19 }
 0x81e   :  { %v1640_v21 = vpop.f32.mrb[14].mxu0  ;;  %v1711_v26 = vpop.f32.mrb[22].mxu1 }
 0x81f   :  { %v2702_v29 = vadd.f32 %v1640_v21, %v3179_v58  ;;  %v1642_v34 = vpop.f32.mrb[15].mxu0  ;;  %v2231_v55 = vpop.f32.mrb[23].mxu1  ;;  %v1729_v28 = vadd.f32 %v3194_v27, %v1711_v26 }
 0x820   :  { %v2703_v18 = vadd.f32 %v1642_v34, %v3188_v11 }
 0x821   :  { %v1787_v7 = vmul.f32 -1.442695, %v2702_v29 }
 0x822   :  { %v1788_v50 = vmul.f32 -1.442695, %v2703_v18 }
 0x823   :  { %2793 = vpow2.f32 %v1787_v7 }
 0x824   :  { %2795 = vpow2.f32 %v1788_v50 }
 0x82d   :  { %v2794_v20 = vpop.eup %2793 }
 0x82e   :  { %v1719_v24 = vadd.f32 1.0, %v2794_v20  ;;  %v2796_v25 = vpop.eup %2795 }
 0x82f   :  { %v1726_v36 = vadd.f32 1.0, %v2796_v25 }
 0x830   :  { %2797 = vrcp.f32 %v1719_v24 }
 0x83a   :  { %v2798_v30 = vpop.eup %2797 }
 0x83b   :  { %v1730_v32 = vmul.f32 %v2798_v30, %v1729_v28 }
 0x83d   :  { %v1731_v35 = vadd.f32 %v1730_v32, %v3183_v0 }
 0x83f   :  { %2799 = vtanh.f32 %v1731_v35 }
 0x840   :  { %2801 = vrcp.f32 %v1726_v36 }
 0x849   :  { %v2800_v58 = vpop.eup %2799 }
 0x84a   :  { %v1733_v43 = vsub.f32 %v1565_v19, %v2800_v58  ;;  %v2802_v37 = vpop.eup %2801 }
 0x84c   :  { %v1734_v59 = vmul.f32 %v2802_v37, %v1733_v43 }
 0x84e   :  { %v1735_v11 = vadd.f32 %v2800_v58, %v1734_v59 }
 0x850   :  { %1789 = vst [vmem:[%s3492_s5 + $0x38] sm:$0xff] %v1735_v11 }

</bundles_post_ra>
